<compile_context>
chip_gen: v6e
topology: v6e:2x2x1
jax: 0.10.0
libtpu: 0.0.40
codegen_flags: <defaults>
</compile_context>

<pallas_src>
import functools
import math

import jax
import jax.numpy as jnp
from jax.experimental import pallas as pl
from jax.experimental.pallas import tpu as pltpu

LANE = 128  # pad every dim to a multiple of this -> (8,128)-friendly, lane-dense


# ----------------------------- small helpers ------------------------------ #
def _round_up(x, m):
    return ((x + m - 1) // m) * m


def _pad2d(a, rows, cols):
    r, c = a.shape
    if r == rows and c == cols:
        return a
    return jnp.pad(a, ((0, rows - r), (0, cols - c)))


def _pick_tile_m(m_pad):
    """m_pad is a multiple of 128; pick the largest aligned tile that divides it."""
    for t in (512, 256, 128):
        if m_pad >= t and m_pad % t == 0:
            return t
    return m_pad


# ------------------------------- kernels ---------------------------------- #
def _matmul_kernel(x_ref, w_ref, o_ref):
    # support_tile = x_tile @ W   (f32 accumulation on the MXU)
    o_ref[...] = jnp.dot(
        x_ref[...], w_ref[...], preferred_element_type=jnp.float32
    ).astype(o_ref.dtype)


def _propagate_kernel(adj_ref, s_ref, b_ref, o_ref, *, apply_relu):
    # out_tile = adj_tile @ support + bias   (optional relu), f32 accumulation
    out = jnp.dot(adj_ref[...], s_ref[...], preferred_element_type=jnp.float32)
    out = out + b_ref[...].astype(jnp.float32)
    if apply_relu:
        out = jnp.maximum(out, 0.0)
    o_ref[...] = out.astype(o_ref.dtype)


# --------------------------- pallas_call wrappers -------------------------- #
def _pallas_matmul(x, w, *, tile_m, out_dtype):
    """x:(M,K) @ w:(K,N) -> (M,N); all dims already 128-multiples, M % tile_m == 0."""
    m, k = x.shape
    _, n = w.shape
    return pl.pallas_call(
        _matmul_kernel,
        out_shape=jax.ShapeDtypeStruct((m, n), out_dtype),
        grid_spec=pltpu.PrefetchScalarGridSpec(
            num_scalar_prefetch=0,
            grid=(m // tile_m,),
            in_specs=[
                pl.BlockSpec((tile_m, k), lambda i: (i, 0)),   # x: tiled over rows
                pl.BlockSpec((k, n), lambda i: (0, 0)),        # W: resident
            ],
            out_specs=pl.BlockSpec((tile_m, n), lambda i: (i, 0)),
        ),
        compiler_params=pltpu.CompilerParams(
            dimension_semantics=("parallel",),
        ),
    )(x, w)


def _pallas_propagate(adj, support, bias_2d, *, apply_relu, tile_m, out_dtype):
    """adj:(M,K) @ support:(K,N) + bias:(1,N) [, relu] -> (M,N)."""
    m, k = adj.shape
    _, n = support.shape
    kernel = functools.partial(_propagate_kernel, apply_relu=apply_relu)
    return pl.pallas_call(
        kernel,
        out_shape=jax.ShapeDtypeStruct((m, n), out_dtype),
        grid_spec=pltpu.PrefetchScalarGridSpec(
            num_scalar_prefetch=0,
            grid=(m // tile_m,),
            in_specs=[
                pl.BlockSpec((tile_m, k), lambda i: (i, 0)),   # adj: tiled over rows
                pl.BlockSpec((k, n), lambda i: (0, 0)),        # support: resident
                pl.BlockSpec((1, n), lambda i: (0, 0)),        # bias: resident
            ],
            out_specs=pl.BlockSpec((tile_m, n), lambda i: (i, 0)),
        ),
        compiler_params=pltpu.CompilerParams(
            dimension_semantics=("parallel",),
        ),
    )(adj, support, bias_2d)


# ------------------------------ Machine.forward ---------------------------- #
@functools.partial(jax.jit, static_argnames=("gcn_k", "compute_dtype"))
def machine_forward(adj, embeddings, w1, b1, w2, b2, *, gcn_k=5,
                    compute_dtype=jnp.bfloat16):
    """out = adj @ (concat([relu(adj @ (E @ W1) + b1)] * gcn_k) @ W2) + b2."""
    n = adj.shape[0]
    d1 = embeddings.shape[1]
    d2 = w1.shape[1]
    d3 = w2.shape[1]
    dcat = gcn_k * d2

    # --- zero-pad everything to multiples of 128 (lane-dense, MXU-aligned) ---
    n_pad = _round_up(n, LANE)
    d1_pad = _round_up(d1, LANE)
    d2_pad = _round_up(d2, LANE)
    d3_pad = _round_up(d3, LANE)
    dcat_pad = _round_up(dcat, LANE)
    tile_m = _pick_tile_m(n_pad)

    cd = compute_dtype
    adj_p = _pad2d(adj, n_pad, n_pad).astype(cd)
    emb_p = _pad2d(embeddings, n_pad, d1_pad).astype(cd)
    w1_p = _pad2d(w1, d1_pad, d2_pad).astype(cd)
    w2_p = _pad2d(w2, dcat_pad, d3_pad).astype(cd)
    b1_p = _pad2d(b1.reshape(1, -1), 1, d2_pad).astype(jnp.float32)
    b2_p = _pad2d(b2.reshape(1, -1), 1, d3_pad).astype(jnp.float32)

    # gcn1 (computed once -- the gcn_k branches in the PyTorch forward are identical)
    s1 = _pallas_matmul(emb_p, w1_p, tile_m=tile_m, out_dtype=cd)          # (n_pad, d2_pad)
    h = _pallas_propagate(adj_p, s1, b1_p, apply_relu=True,
                          tile_m=tile_m, out_dtype=cd)                     # (n_pad, d2_pad)

    # concat of gcn_k identical branches along the feature axis (layout work only)
    h_cat = jnp.tile(h[:, :d2], (1, gcn_k))                                # (n_pad, gcn_k*d2)
    if dcat_pad != dcat:
        h_cat = jnp.pad(h_cat, ((0, 0), (0, dcat_pad - dcat)))

    # gcn2
    s2 = _pallas_matmul(h_cat, w2_p, tile_m=tile_m, out_dtype=cd)          # (n_pad, d3_pad)
    out = _pallas_propagate(adj_p, s2, b2_p, apply_relu=False,
                            tile_m=tile_m, out_dtype=jnp.float32)          # (n_pad, d3_pad)

    return out[:n, :d3]


# ---------------------- plain-JAX reference (same dtype flow) -------------- #
def _machine_reference(adj, embeddings, w1, b1, w2, b2, gcn_k, compute_dtype):
    cd = compute_dtype
    adj_c = adj.astype(cd)
    emb_c = embeddings.astype(cd)
    w1_c = w1.astype(cd)
    w2_c = w2.astype(cd)
    s1 = jnp.dot(emb_c, w1_c, preferred_element_type=jnp.float32).astype(cd)
    h = jnp.maximum(
        jnp.dot(adj_c, s1, preferred_element_type=jnp.float32) + b1[None, :], 0.0
    ).astype(cd)
    h_cat = jnp.tile(h, (1, gcn_k))
    s2 = jnp.dot(h_cat, w2_c, preferred_element_type=jnp.float32).astype(cd)
    return jnp.dot(adj_c, s2, preferred_element_type=jnp.float32) + b2[None, :]


# ----------------------------------- demo ---------------------------------- #
if __name__ == "__main__":
    key = jax.random.PRNGKey(0)
    k_emb, k_adj, kw1, kb1, kw2, kb2 = jax.random.split(key, 6)

    # Small, module-consistent shapes (ini_emb_mode='par').
    node_number = 256
    d_1 = d_2 = d_3 = 128
    gcn_k = 5

    # Parameter init matching the PyTorch module's distributions.
    xav = math.sqrt(6.0 / (node_number + d_1))          # xavier_uniform_
    ini_embeddings = jax.random.uniform(
        k_emb, (node_number, d_1), jnp.float32, -xav, xav)
    stdv1 = 1.0 / math.sqrt(d_2)
    w1 = jax.random.uniform(kw1, (d_1, d_2), jnp.float32, -stdv1, stdv1)
    b1 = jax.random.uniform(kb1, (d_2,), jnp.float32, -stdv1, stdv1)
    stdv2 = 1.0 / math.sqrt(d_3)
    w2 = jax.random.uniform(kw2, (gcn_k * d_2, d_3), jnp.float32, -stdv2, stdv2)
    b2 = jax.random.uniform(kb2, (d_3,), jnp.float32, -stdv2, stdv2)

    # Dense row-normalized adjacency-like matrix.
    adj_raw = jax.random.uniform(k_adj, (node_number, node_number), jnp.float32)
    adj = adj_raw / jnp.sum(adj_raw, axis=1, keepdims=True)

    out = machine_forward(adj, ini_embeddings, w1, b1, w2, b2, gcn_k=gcn_k)
    out = jax.block_until_ready(out)

    ref = _machine_reference(adj, ini_embeddings, w1, b1, w2, b2, gcn_k, jnp.bfloat16)

    assert out.shape == (node_number, d_3)
    assert jnp.allclose(out, ref, atol=1e-2, rtol=1e-2), "mismatch vs reference"

    print("KERNEL_OK")
</pallas_src>

<mosaic_0001>
module attributes {stable_mosaic.version = 11 : i64} {
  func.func @_matmul_kernel(%arg0: i32, %arg1: memref<256x128xbf16, #tpu.memory_space<vmem>>, %arg2: memref<128x128xbf16, #tpu.memory_space<vmem>>, %arg3: memref<256x128xbf16, #tpu.memory_space<vmem>>) attributes {dimension_semantics = [#tpu.dimension_semantics<parallel>], iteration_bounds = array<i64: 1>, scalar_prefetch = 0 : i64, scratch_operands = 0 : i64, tpu.core_type = #tpu.core_type<tc>, window_params = [{transform_indices = @transform_0, window_bounds = array<i64: 256, 128>}, {pipeline_mode = #tpu.pipeline_mode<synchronous>, transform_indices = @transform_1, window_bounds = array<i64: 128, 128>}, {transform_indices = @transform_2, window_bounds = array<i64: 256, 128>}]} {
    %c0 = arith.constant 0 : index
    %c0_0 = arith.constant 0 : index
    %0 = vector.load %arg1[%c0, %c0_0] : memref<256x128xbf16, #tpu.memory_space<vmem>>, vector<256x128xbf16>
    %c0_1 = arith.constant 0 : index
    %c0_2 = arith.constant 0 : index
    %1 = vector.load %arg2[%c0_1, %c0_2] : memref<128x128xbf16, #tpu.memory_space<vmem>>, vector<128x128xbf16>
    %cst = arith.constant dense<0.000000e+00> : vector<256x128xf32>
    %2 = tpu.matmul %0, %1, %cst {dimension_numbers = #tpu.dot_dimension_numbers<[1], [0], [0], [1], [0, 0, 1, 1], [], []>} : vector<256x128xbf16>, vector<128x128xbf16>, vector<256x128xf32> -> vector<256x128xf32>
    %3 = arith.truncf %2 : vector<256x128xf32> to vector<256x128xbf16>
    %c0_3 = arith.constant 0 : index
    %c0_4 = arith.constant 0 : index
    %4 = vector.load %arg3[%c0_3, %c0_4] : memref<256x128xbf16, #tpu.memory_space<vmem>>, vector<256x128xbf16>
    tpu.vector_store %arg3[%c0_3, %c0_4], %3 {strides = array<i32>} : memref<256x128xbf16, #tpu.memory_space<vmem>>, vector<256x128xbf16>,
    return
  }
  func.func @transform_0(%arg0: i32) -> (i32, i32) {
    %c0_i32 = arith.constant 0 : i32
    %c0_i32_0 = arith.constant 0 : i32
    return %arg0, %c0_i32 : i32, i32
  }
  func.func @transform_1(%arg0: i32) -> (i32, i32) {
    %c0_i32 = arith.constant 0 : i32
    %c0_i32_0 = arith.constant 0 : i32
    %c0_i32_1 = arith.constant 0 : i32
    return %c0_i32, %c0_i32_0 : i32, i32
  }
  func.func @transform_2(%arg0: i32) -> (i32, i32) {
    %c0_i32 = arith.constant 0 : i32
    %c0_i32_0 = arith.constant 0 : i32
    return %arg0, %c0_i32 : i32, i32
  }
}

module attributes {stable_mosaic.version = 11 : i64} {
  func.func @_propagate_kernel(%arg0: i32, %arg1: memref<256x256xbf16, #tpu.memory_space<vmem>>, %arg2: memref<256x128xbf16, #tpu.memory_space<vmem>>, %arg3: memref<1x128xf32, #tpu.memory_space<vmem>>, %arg4: memref<256x128xbf16, #tpu.memory_space<vmem>>) attributes {dimension_semantics = [#tpu.dimension_semantics<parallel>], iteration_bounds = array<i64: 1>, scalar_prefetch = 0 : i64, scratch_operands = 0 : i64, tpu.core_type = #tpu.core_type<tc>, window_params = [{transform_indices = @transform_0, window_bounds = array<i64: 256, 256>}, {pipeline_mode = #tpu.pipeline_mode<synchronous>, transform_indices = @transform_1, window_bounds = array<i64: 256, 128>}, {pipeline_mode = #tpu.pipeline_mode<synchronous>, transform_indices = @transform_2, window_bounds = array<i64: 1, 128>}, {transform_indices = @transform_3, window_bounds = array<i64: 256, 128>}]} {
    %c0 = arith.constant 0 : index
    %c0_0 = arith.constant 0 : index
    %0 = vector.load %arg1[%c0, %c0_0] : memref<256x256xbf16, #tpu.memory_space<vmem>>, vector<256x256xbf16>
    %c0_1 = arith.constant 0 : index
    %c0_2 = arith.constant 0 : index
    %1 = vector.load %arg2[%c0_1, %c0_2] : memref<256x128xbf16, #tpu.memory_space<vmem>>, vector<256x128xbf16>
    %cst = arith.constant dense<0.000000e+00> : vector<256x128xf32>
    %2 = tpu.matmul %0, %1, %cst {dimension_numbers = #tpu.dot_dimension_numbers<[1], [0], [0], [1], [0, 0, 1, 1], [], []>} : vector<256x256xbf16>, vector<256x128xbf16>, vector<256x128xf32> -> vector<256x128xf32>
    %c0_3 = arith.constant 0 : index
    %c0_4 = arith.constant 0 : index
    %3 = vector.load %arg3[%c0_3, %c0_4] : memref<1x128xf32, #tpu.memory_space<vmem>>, vector<1x128xf32>
    %4 = vector.broadcast %3 : vector<1x128xf32> to vector<256x128xf32>
    %5 = arith.addf %2, %4 : vector<256x128xf32>
    %cst_5 = arith.constant 0.000000e+00 : f32
    %6 = vector.broadcast %cst_5 : f32 to vector<256x128xf32>
    %7 = arith.maximumf %5, %6 : vector<256x128xf32>
    %8 = arith.truncf %7 : vector<256x128xf32> to vector<256x128xbf16>
    %c0_6 = arith.constant 0 : index
    %c0_7 = arith.constant 0 : index
    %9 = vector.load %arg4[%c0_6, %c0_7] : memref<256x128xbf16, #tpu.memory_space<vmem>>, vector<256x128xbf16>
    tpu.vector_store %arg4[%c0_6, %c0_7], %8 {strides = array<i32>} : memref<256x128xbf16, #tpu.memory_space<vmem>>, vector<256x128xbf16>,
    return
  }
  func.func @transform_0(%arg0: i32) -> (i32, i32) {
    %c0_i32 = arith.constant 0 : i32
    %c0_i32_0 = arith.constant 0 : i32
    return %arg0, %c0_i32 : i32, i32
  }
  func.func @transform_1(%arg0: i32) -> (i32, i32) {
    %c0_i32 = arith.constant 0 : i32
    %c0_i32_0 = arith.constant 0 : i32
    %c0_i32_1 = arith.constant 0 : i32
    return %c0_i32, %c0_i32_0 : i32, i32
  }
  func.func @transform_2(%arg0: i32) -> (i32, i32) {
    %c0_i32 = arith.constant 0 : i32
    %c0_i32_0 = arith.constant 0 : i32
    %c0_i32_1 = arith.constant 0 : i32
    return %c0_i32, %c0_i32_0 : i32, i32
  }
  func.func @transform_3(%arg0: i32) -> (i32, i32) {
    %c0_i32 = arith.constant 0 : i32
    %c0_i32_0 = arith.constant 0 : i32
    return %arg0, %c0_i32 : i32, i32
  }
}

module attributes {stable_mosaic.version = 11 : i64} {
  func.func @_matmul_kernel(%arg0: i32, %arg1: memref<256x640xbf16, #tpu.memory_space<vmem>>, %arg2: memref<640x128xbf16, #tpu.memory_space<vmem>>, %arg3: memref<256x128xbf16, #tpu.memory_space<vmem>>) attributes {dimension_semantics = [#tpu.dimension_semantics<parallel>], iteration_bounds = array<i64: 1>, scalar_prefetch = 0 : i64, scratch_operands = 0 : i64, tpu.core_type = #tpu.core_type<tc>, window_params = [{transform_indices = @transform_0, window_bounds = array<i64: 256, 640>}, {pipeline_mode = #tpu.pipeline_mode<synchronous>, transform_indices = @transform_1, window_bounds = array<i64: 640, 128>}, {transform_indices = @transform_2, window_bounds = array<i64: 256, 128>}]} {
    %c0 = arith.constant 0 : index
    %c0_0 = arith.constant 0 : index
    %0 = vector.load %arg1[%c0, %c0_0] : memref<256x640xbf16, #tpu.memory_space<vmem>>, vector<256x640xbf16>
    %c0_1 = arith.constant 0 : index
    %c0_2 = arith.constant 0 : index
    %1 = vector.load %arg2[%c0_1, %c0_2] : memref<640x128xbf16, #tpu.memory_space<vmem>>, vector<640x128xbf16>
    %cst = arith.constant dense<0.000000e+00> : vector<256x128xf32>
    %2 = tpu.matmul %0, %1, %cst {dimension_numbers = #tpu.dot_dimension_numbers<[1], [0], [0], [1], [0, 0, 1, 1], [], []>} : vector<256x640xbf16>, vector<640x128xbf16>, vector<256x128xf32> -> vector<256x128xf32>
    %3 = arith.truncf %2 : vector<256x128xf32> to vector<256x128xbf16>
    %c0_3 = arith.constant 0 : index
    %c0_4 = arith.constant 0 : index
    %4 = vector.load %arg3[%c0_3, %c0_4] : memref<256x128xbf16, #tpu.memory_space<vmem>>, vector<256x128xbf16>
    tpu.vector_store %arg3[%c0_3, %c0_4], %3 {strides = array<i32>} : memref<256x128xbf16, #tpu.memory_space<vmem>>, vector<256x128xbf16>,
    return
  }
  func.func @transform_0(%arg0: i32) -> (i32, i32) {
    %c0_i32 = arith.constant 0 : i32
    %c0_i32_0 = arith.constant 0 : i32
    return %arg0, %c0_i32 : i32, i32
  }
  func.func @transform_1(%arg0: i32) -> (i32, i32) {
    %c0_i32 = arith.constant 0 : i32
    %c0_i32_0 = arith.constant 0 : i32
    %c0_i32_1 = arith.constant 0 : i32
    return %c0_i32, %c0_i32_0 : i32, i32
  }
  func.func @transform_2(%arg0: i32) -> (i32, i32) {
    %c0_i32 = arith.constant 0 : i32
    %c0_i32_0 = arith.constant 0 : i32
    return %arg0, %c0_i32 : i32, i32
  }
}

module attributes {stable_mosaic.version = 11 : i64} {
  func.func @_propagate_kernel(%arg0: i32, %arg1: memref<256x256xbf16, #tpu.memory_space<vmem>>, %arg2: memref<256x128xbf16, #tpu.memory_space<vmem>>, %arg3: memref<1x128xf32, #tpu.memory_space<vmem>>, %arg4: memref<256x128xf32, #tpu.memory_space<vmem>>) attributes {dimension_semantics = [#tpu.dimension_semantics<parallel>], iteration_bounds = array<i64: 1>, scalar_prefetch = 0 : i64, scratch_operands = 0 : i64, tpu.core_type = #tpu.core_type<tc>, window_params = [{transform_indices = @transform_0, window_bounds = array<i64: 256, 256>}, {pipeline_mode = #tpu.pipeline_mode<synchronous>, transform_indices = @transform_1, window_bounds = array<i64: 256, 128>}, {pipeline_mode = #tpu.pipeline_mode<synchronous>, transform_indices = @transform_2, window_bounds = array<i64: 1, 128>}, {transform_indices = @transform_3, window_bounds = array<i64: 256, 128>}]} {
    %c0 = arith.constant 0 : index
    %c0_0 = arith.constant 0 : index
    %0 = vector.load %arg1[%c0, %c0_0] : memref<256x256xbf16, #tpu.memory_space<vmem>>, vector<256x256xbf16>
    %c0_1 = arith.constant 0 : index
    %c0_2 = arith.constant 0 : index
    %1 = vector.load %arg2[%c0_1, %c0_2] : memref<256x128xbf16, #tpu.memory_space<vmem>>, vector<256x128xbf16>
    %cst = arith.constant dense<0.000000e+00> : vector<256x128xf32>
    %2 = tpu.matmul %0, %1, %cst {dimension_numbers = #tpu.dot_dimension_numbers<[1], [0], [0], [1], [0, 0, 1, 1], [], []>} : vector<256x256xbf16>, vector<256x128xbf16>, vector<256x128xf32> -> vector<256x128xf32>
    %c0_3 = arith.constant 0 : index
    %c0_4 = arith.constant 0 : index
    %3 = vector.load %arg3[%c0_3, %c0_4] : memref<1x128xf32, #tpu.memory_space<vmem>>, vector<1x128xf32>
    %4 = vector.broadcast %3 : vector<1x128xf32> to vector<256x128xf32>
    %5 = arith.addf %2, %4 : vector<256x128xf32>
    %c0_5 = arith.constant 0 : index
    %c0_6 = arith.constant 0 : index
    %6 = vector.load %arg4[%c0_5, %c0_6] : memref<256x128xf32, #tpu.memory_space<vmem>>, vector<256x128xf32>
    tpu.vector_store %arg4[%c0_5, %c0_6], %5 {strides = array<i32>} : memref<256x128xf32, #tpu.memory_space<vmem>>, vector<256x128xf32>,
    return
  }
  func.func @transform_0(%arg0: i32) -> (i32, i32) {
    %c0_i32 = arith.constant 0 : i32
    %c0_i32_0 = arith.constant 0 : i32
    return %arg0, %c0_i32 : i32, i32
  }
  func.func @transform_1(%arg0: i32) -> (i32, i32) {
    %c0_i32 = arith.constant 0 : i32
    %c0_i32_0 = arith.constant 0 : i32
    %c0_i32_1 = arith.constant 0 : i32
    return %c0_i32, %c0_i32_0 : i32, i32
  }
  func.func @transform_2(%arg0: i32) -> (i32, i32) {
    %c0_i32 = arith.constant 0 : i32
    %c0_i32_0 = arith.constant 0 : i32
    %c0_i32_1 = arith.constant 0 : i32
    return %c0_i32, %c0_i32_0 : i32, i32
  }
  func.func @transform_3(%arg0: i32) -> (i32, i32) {
    %c0_i32 = arith.constant 0 : i32
    %c0_i32_0 = arith.constant 0 : i32
    return %arg0, %c0_i32 : i32, i32
  }
}

</mosaic_0001>

<bundles_post_ra>
// kernel: machine_forward.4
= control target key start
LH: loop header
LB: loop body
LE: loop exit
PB: predicated region body
PF: predicated region fallthrough
CT: control target
= control target key end

     0   :  { %s959_s1 = inlined_call_operand.vmem [shape: bf16[128,128], index: 1, kind: input, shape index: {}]   ;;  %s960_s0 = inlined_call_operand.vmem [shape: bf16[256,128], index: 0, kind: input, shape index: {}]   ;;  %s961_s2 = inlined_call_operand.vmem [shape: bf16[256,128], index: 2, kind: output, shape index: {}]  }
   0x1   :  { %v800_v0 = vld [vmem:[%s959_s1 + $0x38] sm:$0xff]   ;;  %v801_v1 = vld [vmem:[%s959_s1 + $0x30] sm:$0xff]   ;;  %v802_v2 = vld [vmem:[%s959_s1 + $0x28] sm:$0xff]  }
   0x2   :  { %736 = vmatprep.subr.bf16.mxu0 %v800_v0  ;;  %784 = vmatprep.subr.bf16.mxu1 %v800_v0  ;;  %v803_v3 = vld [vmem:[%s959_s1 + $0x20] sm:$0xff]   ;;  %v804_v6 = vld [vmem:[%s959_s1 + $0x18] sm:$0xff]   ;;  %v805_v7 = vld [vmem:[%s959_s1 + $0x10] sm:$0xff]  }
   0x3   :  { %737 = vmatpush3.bf16.msra.mxu0 %v800_v0  ;;  %792 = vmatpush3.bf16.msra.mxu1 %v800_v0  ;;  %v808_v4 = vld [vmem:[%s960_s0] sm:$0xff]   ;;  %v806_v8 = vld [vmem:[%s959_s1 + $0x8] sm:$0xff]   ;;  %v812_v12 = vld [vmem:[%s960_s0 + $0x10] sm:$0xff]  }
   0x4   :  { %738 = vmatprep.subr.bf16.mxu0 %v801_v1  ;;  %785 = vmatprep.subr.bf16.mxu1 %v801_v1  ;;  %v809_v5 = vld [vmem:[%s960_s0 + $0x40] sm:$0xff]   ;;  %v810_v10 = vld [vmem:[%s960_s0 + $0x8] sm:$0xff]   ;;  %v813_v13 = vld [vmem:[%s960_s0 + $0x50] sm:$0xff]  }
   0x5   :  { %752 = vmatprep.mubr.bf16.mxu0 %v808_v4  ;;  %768 = vmatprep.mubr.bf16.mxu1 %v809_v5  ;;  %v807_v9 = vld [vmem:[%s959_s1] sm:$0xff]   ;;  %v811_v11 = vld [vmem:[%s960_s0 + $0x48] sm:$0xff]   ;;  %v814_v14 = vld [vmem:[%s960_s0 + $0x18] sm:$0xff]  }
   0x6   :  { %v815_v15 = vld [vmem:[%s960_s0 + $0x58] sm:$0xff]   ;;  %v816_v16 = vld [vmem:[%s960_s0 + $0x20] sm:$0xff]   ;;  %v818_v18 = vld [vmem:[%s960_s0 + $0x28] sm:$0xff]  }
   0x7   :  { %739 = vmatpush3.bf16.msra.mxu0 %v801_v1  ;;  %793 = vmatpush3.bf16.msra.mxu1 %v801_v1  ;;  %v817_v17 = vld [vmem:[%s960_s0 + $0x60] sm:$0xff]   ;;  %v819_v19 = vld [vmem:[%s960_s0 + $0x68] sm:$0xff]   ;;  %v820_v20 = vld [vmem:[%s960_s0 + $0x30] sm:$0xff]  }
   0x8   :  { %740 = vmatprep.subr.bf16.mxu0 %v802_v2  ;;  %786 = vmatprep.subr.bf16.mxu1 %v802_v2  ;;  %v821_v21 = vld [vmem:[%s960_s0 + $0x70] sm:$0xff]   ;;  %v822_v22 = vld [vmem:[%s960_s0 + $0x38] sm:$0xff]  }
   0x9   :  { %v823_v23 = vld [vmem:[%s960_s0 + $0x78] sm:$0xff]  }
   0xb   :  { %741 = vmatpush3.bf16.msra.mxu0 %v802_v2  ;;  %794 = vmatpush3.bf16.msra.mxu1 %v802_v2 }
   0xc   :  { %742 = vmatprep.subr.bf16.mxu0 %v803_v3  ;;  %787 = vmatprep.subr.bf16.mxu1 %v803_v3 }
   0xf   :  { %743 = vmatpush3.bf16.msra.mxu0 %v803_v3  ;;  %795 = vmatpush3.bf16.msra.mxu1 %v803_v3 }
  0x10   :  { %744 = vmatprep.subr.bf16.mxu0 %v804_v6  ;;  %788 = vmatprep.subr.bf16.mxu1 %v804_v6 }
  0x13   :  { %745 = vmatpush3.bf16.msra.mxu0 %v804_v6  ;;  %796 = vmatpush3.bf16.msra.mxu1 %v804_v6 }
  0x14   :  { %746 = vmatprep.subr.bf16.mxu0 %v805_v7  ;;  %789 = vmatprep.subr.bf16.mxu1 %v805_v7 }
  0x17   :  { %747 = vmatpush3.bf16.msra.mxu0 %v805_v7  ;;  %797 = vmatpush3.bf16.msra.mxu1 %v805_v7 }
  0x18   :  { %748 = vmatprep.subr.bf16.mxu0 %v806_v8  ;;  %790 = vmatprep.subr.bf16.mxu1 %v806_v8 }
  0x1b   :  { %749 = vmatpush3.bf16.msra.mxu0 %v806_v8  ;;  %798 = vmatpush3.bf16.msra.mxu1 %v806_v8 }
  0x1c   :  { %750 = vmatprep.subr.bf16.mxu0 %v807_v9  ;;  %791 = vmatprep.subr.bf16.mxu1 %v807_v9 }
  0x1f   :  { %751 = vmatpush3.bf16.msra.mxu0 %v807_v9  ;;  %799 = vmatpush3.bf16.msra.mxu1 %v807_v9 }
  0x22   :  { %753 = vmatmul.mubr.bf16.vlgmr.msra.gmra.mxu0 %v810_v10  ;;  %769 = vmatmul.mubr.bf16.vlgmr.msra.gmra.mxu1 %v811_v11 }
  0x23   :  { %756 = vmatprep.mubr.bf16.mxu0 %v812_v12  ;;  %772 = vmatprep.mubr.bf16.mxu1 %v813_v13 }
  0x2a   :  { %757 = vmatmul.mubr.bf16.gmra.mxu0 %v814_v14  ;;  %773 = vmatmul.mubr.bf16.gmra.mxu1 %v815_v15 }
  0x2b   :  { %760 = vmatprep.mubr.bf16.mxu0 %v816_v16  ;;  %776 = vmatprep.mubr.bf16.mxu1 %v817_v17 }
  0x32   :  { %761 = vmatmul.mubr.bf16.gmra.mxu0 %v818_v18  ;;  %777 = vmatmul.mubr.bf16.gmra.mxu1 %v819_v19 }
  0x33   :  { %764 = vmatprep.mubr.bf16.mxu0 %v820_v20  ;;  %780 = vmatprep.mubr.bf16.mxu1 %v821_v21 }
  0x3a   :  { %765 = vmatmul.mubr.bf16.gmra.mxu0 %v822_v22  ;;  %781 = vmatmul.mubr.bf16.gmra.mxu1 %v823_v23 }
  0xe2   :  { %v754_v24 = vpop.f32.mrf.mxu0  ;;  %v770_v25 = vpop.f32.mrf.mxu1 }
  0xe4   :  { %v238_v26 = vpop.f32.mrf.mxu0  ;;  %v302_v27 = vpop.f32.mrf.mxu1 }
  0xe6   :  { %v755_v28 = vpop.f32.mrf.mxu0  ;;  %v771_v29 = vpop.f32.mrf.mxu1 }
  0xe7   :  { %v625_v30 = vpack.c.bf16 %v755_v28, %v754_v24  ;;  %v665_v31 = vpack.c.bf16 %v771_v29, %v770_v25 }
  0xe8   :  { %v241_v32 = vpop.f32.mrf.mxu0  ;;  %v305_v33 = vpop.f32.mrf.mxu1 }
  0xe9   :  { %697 = vst [vmem:[%s961_s2 + $0x8] sm:$0xff] %v625_v30   ;;  %705 = vst [vmem:[%s961_s2 + $0x48] sm:$0xff] %v665_v31   ;;  %v620_v34 = vpack.c.bf16 %v241_v32, %v238_v26  ;;  %v660_v35 = vpack.c.bf16 %v305_v33, %v302_v27 }
  0xea   :  { %v758_v36 = vpop.f32.mrf.mxu0  ;;  %v774_v37 = vpop.f32.mrf.mxu1 }
  0xeb   :  { %621 = vst [vmem:[%s961_s2] sm:$0xff] %v620_v34   ;;  %704 = vst [vmem:[%s961_s2 + $0x40] sm:$0xff] %v660_v35  }
  0xec   :  { %v254_v38 = vpop.f32.mrf.mxu0  ;;  %v318_v39 = vpop.f32.mrf.mxu1 }
  0xee   :  { %v759_v40 = vpop.f32.mrf.mxu0  ;;  %v775_v41 = vpop.f32.mrf.mxu1 }
  0xef   :  { %v635_v42 = vpack.c.bf16 %v759_v40, %v758_v36  ;;  %v675_v43 = vpack.c.bf16 %v775_v41, %v774_v37 }
  0xf0   :  { %v257_v44 = vpop.f32.mrf.mxu0  ;;  %v321_v45 = vpop.f32.mrf.mxu1 }
  0xf1   :  { %699 = vst [vmem:[%s961_s2 + $0x18] sm:$0xff] %v635_v42   ;;  %707 = vst [vmem:[%s961_s2 + $0x58] sm:$0xff] %v675_v43   ;;  %v630_v46 = vpack.c.bf16 %v257_v44, %v254_v38  ;;  %v670_v47 = vpack.c.bf16 %v321_v45, %v318_v39 }
  0xf2   :  { %v762_v48 = vpop.f32.mrf.mxu0  ;;  %v778_v49 = vpop.f32.mrf.mxu1 }
  0xf3   :  { %698 = vst [vmem:[%s961_s2 + $0x10] sm:$0xff] %v630_v46   ;;  %706 = vst [vmem:[%s961_s2 + $0x50] sm:$0xff] %v670_v47  }
  0xf4   :  { %v270_v50 = vpop.f32.mrf.mxu0  ;;  %v334_v51 = vpop.f32.mrf.mxu1 }
  0xf6   :  { %v763_v52 = vpop.f32.mrf.mxu0  ;;  %v779_v53 = vpop.f32.mrf.mxu1 }
  0xf7   :  { %v645_v54 = vpack.c.bf16 %v763_v52, %v762_v48  ;;  %v685_v55 = vpack.c.bf16 %v779_v53, %v778_v49 }
  0xf8   :  { %v273_v56 = vpop.f32.mrf.mxu0  ;;  %v337_v57 = vpop.f32.mrf.mxu1 }
  0xf9   :  { %701 = vst [vmem:[%s961_s2 + $0x28] sm:$0xff] %v645_v54   ;;  %709 = vst [vmem:[%s961_s2 + $0x68] sm:$0xff] %v685_v55   ;;  %v640_v58 = vpack.c.bf16 %v273_v56, %v270_v50  ;;  %v680_v59 = vpack.c.bf16 %v337_v57, %v334_v51 }
  0xfa   :  { %v766_v60 = vpop.f32.mrf.mxu0  ;;  %v782_v61 = vpop.f32.mrf.mxu1 }
  0xfb   :  { %700 = vst [vmem:[%s961_s2 + $0x20] sm:$0xff] %v640_v58   ;;  %708 = vst [vmem:[%s961_s2 + $0x60] sm:$0xff] %v680_v59  }
  0xfc   :  { %v286_v62 = vpop.f32.mrf.mxu0  ;;  %v350_v63 = vpop.f32.mrf.mxu1 }
  0xfe   :  { %v767_v0 = vpop.f32.mrf.mxu0  ;;  %v783_v1 = vpop.f32.mrf.mxu1 }
  0xff   :  { %v655_v2 = vpack.c.bf16 %v767_v0, %v766_v60  ;;  %v695_v3 = vpack.c.bf16 %v783_v1, %v782_v61 }
 0x100   :  { %v289_v4 = vpop.f32.mrf.mxu0  ;;  %v353_v5 = vpop.f32.mrf.mxu1 }
 0x101   :  { %703 = vst [vmem:[%s961_s2 + $0x38] sm:$0xff] %v655_v2   ;;  %711 = vst [vmem:[%s961_s2 + $0x78] sm:$0xff] %v695_v3   ;;  %v650_v6 = vpack.c.bf16 %v289_v4, %v286_v62  ;;  %v690_v7 = vpack.c.bf16 %v353_v5, %v350_v63 }
 0x103   :  { %702 = vst [vmem:[%s961_s2 + $0x30] sm:$0xff] %v650_v6   ;;  %710 = vst [vmem:[%s961_s2 + $0x70] sm:$0xff] %v690_v7  }

// kernel: machine_forward.5
= control target key start
LH: loop header
LB: loop body
LE: loop exit
PB: predicated region body
PF: predicated region fallthrough
CT: control target
= control target key end

     0   :  { %s1348_s1 = inlined_call_operand.vmem [shape: bf16[256,128], index: 1, kind: input, shape index: {}]   ;;  %s1349_s0 = inlined_call_operand.vmem [shape: bf16[256,256], index: 0, kind: input, shape index: {}]   ;;  %s1350_s2 = inlined_call_operand.vmem [shape: f32[1,128], index: 2, kind: input, shape index: {}]   ;;  %s1351_s3 = inlined_call_operand.vmem [shape: bf16[256,128], index: 3, kind: output, shape index: {}]  }
   0x1   :  { %v1035_v0 = vld [vmem:[%s1348_s1 + $0x78] sm:$0xff]   ;;  %v1037_v2 = vld [vmem:[%s1348_s1 + $0x70] sm:$0xff]   ;;  %v1039_v4 = vld [vmem:[%s1348_s1 + $0x68] sm:$0xff]  }
   0x2   :  { %v1036_v1 = vld [vmem:[%s1348_s1 + $0x38] sm:$0xff]   ;;  %907 = vmatprep.subr.bf16.mxu0 %v1035_v0  ;;  %1019 = vmatprep.subr.bf16.mxu1 %v1035_v0  ;;  %v1038_v3 = vld [vmem:[%s1348_s1 + $0x30] sm:$0xff]   ;;  %v1040_v5 = vld [vmem:[%s1348_s1 + $0x28] sm:$0xff]  }
   0x3   :  { %908 = vmatpush3.bf16.msra.mxu0 %v1036_v1  ;;  %1027 = vmatpush3.bf16.msra.mxu1 %v1036_v1  ;;  %v1041_v6 = vld [vmem:[%s1348_s1 + $0x60] sm:$0xff]   ;;  %v1043_v8 = vld [vmem:[%s1348_s1 + $0x58] sm:$0xff]   ;;  %v1045_v10 = vld [vmem:[%s1348_s1 + $0x50] sm:$0xff]  }
   0x4   :  { %909 = vmatprep.subr.bf16.mxu0 %v1037_v2  ;;  %1020 = vmatprep.subr.bf16.mxu1 %v1037_v2  ;;  %v1042_v7 = vld [vmem:[%s1348_s1 + $0x20] sm:$0xff]   ;;  %v1044_v9 = vld [vmem:[%s1348_s1 + $0x18] sm:$0xff]   ;;  %v1046_v13 = vld [vmem:[%s1348_s1 + $0x10] sm:$0xff]  }
   0x5   :  { %v1053_v11 = vld [vmem:[%s1349_s0 + $0x4] ss:$8 sps:$4 sm:$0xff]   ;;  %v1051_v18 = vld [vmem:[%s1349_s0] ss:$8 sps:$4 sm:$0xff]   ;;  %v1057_v20 = vld [vmem:[%s1349_s0 + $0x14] ss:$8 sps:$4 sm:$0xff]  }
   0x6   :  { %v1056_v12 = vld [vmem:[%s1349_s0 + $0x84] ss:$8 sps:$4 sm:$0xff]   ;;  %374 = vmatprep.mubr.bf16.mxu0 %v1053_v11  ;;  %v1054_v19 = vld [vmem:[%s1349_s0 + $0x80] ss:$8 sps:$4 sm:$0xff]   ;;  %v1059_v21 = vld [vmem:[%s1349_s0 + $0x94] ss:$8 sps:$4 sm:$0xff]  }
   0x7   :  { %910 = vmatpush3.bf16.msra.mxu0 %v1038_v3  ;;  %1028 = vmatpush3.bf16.msra.mxu1 %v1038_v3  ;;  %v1047_v14 = vld [vmem:[%s1348_s1 + $0x48] sm:$0xff]   ;;  %v1049_v16 = vld [vmem:[%s1348_s1 + $0x40] sm:$0xff]   ;;  %v1061_v22 = vld [vmem:[%s1349_s0 + $0x10] ss:$8 sps:$4 sm:$0xff]  }
   0x8   :  { %911 = vmatprep.subr.bf16.mxu0 %v1039_v4  ;;  %1021 = vmatprep.subr.bf16.mxu1 %v1039_v4  ;;  %v1048_v15 = vld [vmem:[%s1348_s1 + $0x8] sm:$0xff]   ;;  %v1050_v17 = vld [vmem:[%s1348_s1] sm:$0xff]   ;;  %v1062_v23 = vld [vmem:[%s1349_s0 + $0x90] ss:$8 sps:$4 sm:$0xff]  }
   0x9   :  { %438 = vmatprep.mubr.bf16.mxu1 %v1056_v12  ;;  %v1063_v24 = vld [vmem:[%s1349_s0 + $0x24] ss:$8 sps:$4 sm:$0xff]   ;;  %v1067_v26 = vld [vmem:[%s1349_s0 + $0x20] ss:$8 sps:$4 sm:$0xff]   ;;  %v1069_v28 = vld [vmem:[%s1349_s0 + $0x34] ss:$8 sps:$4 sm:$0xff]  }
   0xa   :  { %v1065_v25 = vld [vmem:[%s1349_s0 + $0xa4] ss:$8 sps:$4 sm:$0xff]   ;;  %v1068_v27 = vld [vmem:[%s1349_s0 + $0xa0] ss:$8 sps:$4 sm:$0xff]   ;;  %v1071_v29 = vld [vmem:[%s1349_s0 + $0xb4] ss:$8 sps:$4 sm:$0xff]  }
   0xb   :  { %912 = vmatpush3.bf16.msra.mxu0 %v1040_v5  ;;  %1029 = vmatpush3.bf16.msra.mxu1 %v1040_v5  ;;  %v1073_v30 = vld [vmem:[%s1349_s0 + $0x30] ss:$8 sps:$4 sm:$0xff]   ;;  %v1075_v32 = vld [vmem:[%s1349_s0 + $0x44] ss:$8 sps:$4 sm:$0xff]   ;;  %v1079_v34 = vld [vmem:[%s1349_s0 + $0x40] ss:$8 sps:$4 sm:$0xff]  }
   0xc   :  { %913 = vmatprep.subr.bf16.mxu0 %v1041_v6  ;;  %1022 = vmatprep.subr.bf16.mxu1 %v1041_v6  ;;  %v1074_v31 = vld [vmem:[%s1349_s0 + $0xb0] ss:$8 sps:$4 sm:$0xff]   ;;  %v1077_v33 = vld [vmem:[%s1349_s0 + $0xc4] ss:$8 sps:$4 sm:$0xff]   ;;  %v1080_v35 = vld [vmem:[%s1349_s0 + $0xc0] ss:$8 sps:$4 sm:$0xff]  }
   0xd   :  { %v1081_v36 = vld [vmem:[%s1349_s0 + $0x54] ss:$8 sps:$4 sm:$0xff]   ;;  %v1085_v38 = vld [vmem:[%s1349_s0 + $0x50] ss:$8 sps:$4 sm:$0xff]   ;;  %v1087_v40 = vld [vmem:[%s1349_s0 + $0x64] ss:$8 sps:$4 sm:$0xff]  }
   0xe   :  { %v1083_v37 = vld [vmem:[%s1349_s0 + $0xd4] ss:$8 sps:$4 sm:$0xff]   ;;  %v1086_v39 = vld [vmem:[%s1349_s0 + $0xd0] ss:$8 sps:$4 sm:$0xff]   ;;  %v1089_v41 = vld [vmem:[%s1349_s0 + $0xe4] ss:$8 sps:$4 sm:$0xff]  }
   0xf   :  { %914 = vmatpush3.bf16.msra.mxu0 %v1042_v7  ;;  %1030 = vmatpush3.bf16.msra.mxu1 %v1042_v7  ;;  %v1091_v42 = vld [vmem:[%s1349_s0 + $0x60] ss:$8 sps:$4 sm:$0xff]   ;;  %v1093_v44 = vld [vmem:[%s1349_s0 + $0x74] ss:$8 sps:$4 sm:$0xff]   ;;  %v1097_v46 = vld [vmem:[%s1349_s0 + $0x70] ss:$8 sps:$4 sm:$0xff]  }
  0x10   :  { %915 = vmatprep.subr.bf16.mxu0 %v1043_v8  ;;  %1023 = vmatprep.subr.bf16.mxu1 %v1043_v8  ;;  %v1092_v43 = vld [vmem:[%s1349_s0 + $0xe0] ss:$8 sps:$4 sm:$0xff]   ;;  %v1095_v45 = vld [vmem:[%s1349_s0 + $0xf4] ss:$8 sps:$4 sm:$0xff]   ;;  %v1098_v47 = vld [vmem:[%s1349_s0 + $0xf0] ss:$8 sps:$4 sm:$0xff]  }
  0x11   :  { %v1266_v52 = vld [vmem:[%s1350_s2] ss:$0 sm:$0xff] }
  0x13   :  { %916 = vmatpush3.bf16.msra.mxu0 %v1044_v9  ;;  %1031 = vmatpush3.bf16.msra.mxu1 %v1044_v9 }
  0x14   :  { %917 = vmatprep.subr.bf16.mxu0 %v1045_v10  ;;  %1024 = vmatprep.subr.bf16.mxu1 %v1045_v10 }
  0x17   :  { %918 = vmatpush3.bf16.msra.mxu0 %v1046_v13  ;;  %1032 = vmatpush3.bf16.msra.mxu1 %v1046_v13 }
  0x18   :  { %919 = vmatprep.subr.bf16.mxu0 %v1047_v14  ;;  %1025 = vmatprep.subr.bf16.mxu1 %v1047_v14 }
  0x1b   :  { %920 = vmatpush3.bf16.msra.mxu0 %v1048_v15  ;;  %1033 = vmatpush3.bf16.msra.mxu1 %v1048_v15 }
  0x1c   :  { %921 = vmatprep.subr.bf16.mxu0 %v1049_v16  ;;  %1026 = vmatprep.subr.bf16.mxu1 %v1049_v16 }
  0x1f   :  { %922 = vmatpush3.bf16.msra.mxu0 %v1050_v17  ;;  %1034 = vmatpush3.bf16.msra.mxu1 %v1050_v17 }
  0x22   :  { %375 = vmatmul.mubr.bf16.vlgmr.msra.gmra.mxu0 %v1051_v18  ;;  %439 = vmatmul.mubr.bf16.vlgmr.msra.gmra.mxu1 %v1054_v19 }
  0x23   :  { %382 = vmatprep.mubr.bf16.mxu0 %v1057_v20  ;;  %446 = vmatprep.mubr.bf16.mxu1 %v1059_v21 }
  0x2a   :  { %383 = vmatmul.mubr.bf16.gmra.mxu0 %v1061_v22  ;;  %447 = vmatmul.mubr.bf16.gmra.mxu1 %v1062_v23 }
  0x2b   :  { %390 = vmatprep.mubr.bf16.mxu0 %v1063_v24  ;;  %454 = vmatprep.mubr.bf16.mxu1 %v1065_v25 }
  0x32   :  { %391 = vmatmul.mubr.bf16.gmra.mxu0 %v1067_v26  ;;  %455 = vmatmul.mubr.bf16.gmra.mxu1 %v1068_v27 }
  0x33   :  { %398 = vmatprep.mubr.bf16.mxu0 %v1069_v28  ;;  %462 = vmatprep.mubr.bf16.mxu1 %v1071_v29 }
  0x3a   :  { %399 = vmatmul.mubr.bf16.gmra.mxu0 %v1073_v30  ;;  %463 = vmatmul.mubr.bf16.gmra.mxu1 %v1074_v31 }
  0x3b   :  { %406 = vmatprep.mubr.bf16.mxu0 %v1075_v32  ;;  %470 = vmatprep.mubr.bf16.mxu1 %v1077_v33 }
  0x42   :  { %407 = vmatmul.mubr.bf16.gmra.mxu0 %v1079_v34  ;;  %471 = vmatmul.mubr.bf16.gmra.mxu1 %v1080_v35 }
  0x43   :  { %414 = vmatprep.mubr.bf16.mxu0 %v1081_v36  ;;  %478 = vmatprep.mubr.bf16.mxu1 %v1083_v37 }
  0x4a   :  { %415 = vmatmul.mubr.bf16.gmra.mxu0 %v1085_v38  ;;  %479 = vmatmul.mubr.bf16.gmra.mxu1 %v1086_v39 }
  0x4b   :  { %422 = vmatprep.mubr.bf16.mxu0 %v1087_v40  ;;  %486 = vmatprep.mubr.bf16.mxu1 %v1089_v41 }
  0x52   :  { %423 = vmatmul.mubr.bf16.gmra.mxu0 %v1091_v42  ;;  %487 = vmatmul.mubr.bf16.gmra.mxu1 %v1092_v43 }
  0x53   :  { %430 = vmatprep.mubr.bf16.mxu0 %v1093_v44  ;;  %494 = vmatprep.mubr.bf16.mxu1 %v1095_v45 }
  0x5a   :  { %431 = vmatmul.mubr.bf16.gmra.mxu0 %v1097_v46  ;;  %495 = vmatmul.mubr.bf16.gmra.mxu1 %v1098_v47 }
  0xe2   :  { %v923_v48 = vpop.f32.mrf.mxu0  ;;  %v971_v49 = vpop.f32.mrf.mxu1 }
  0xe4   :  { %v924_v50 = vpop.f32.mrf.mxu0  ;;  %v972_v51 = vpop.f32.mrf.mxu1 }
  0xe5   :  { %v925_v53 = vadd.f32 %v924_v50, %v923_v48  ;;  %v973_v54 = vadd.f32 %v972_v51, %v971_v49 }
  0xe6   :  { %v926_v55 = vpop.f32.mrf.mxu0  ;;  %v974_v56 = vpop.f32.mrf.mxu1 }
  0xe7   :  { %v377_v57 = vadd.f32 %v925_v53, %v1266_v52  ;;  %v441_v58 = vadd.f32 %v973_v54, %v1266_v52 }
  0xe8   :  { %v927_v59 = vpop.f32.mrf.mxu0  ;;  %v975_v60 = vpop.f32.mrf.mxu1 }
  0xe9   :  { %v928_v61 = vadd.f32 %v927_v59, %v926_v55  ;;  %v976_v62 = vadd.f32 %v975_v60, %v974_v56  ;;  %v503_v3 = vmax.f32 %v377_v57, 0.0  ;;  %v519_v4 = vmax.f32 %v441_v58, 0.0 }
  0xea   :  { %v929_v63 = vpop.f32.mrf.mxu0  ;;  %v977_v0 = vpop.f32.mrf.mxu1 }
  0xeb   :  { %v380_v1 = vadd.f32 %v928_v61, %v1266_v52  ;;  %v444_v2 = vadd.f32 %v976_v62, %v1266_v52 }
  0xec   :  { %v930_v5 = vpop.f32.mrf.mxu0  ;;  %v978_v6 = vpop.f32.mrf.mxu1 }
  0xed   :  { %v504_v7 = vmax.f32 %v380_v1, 0.0  ;;  %v520_v8 = vmax.f32 %v444_v2, 0.0  ;;  %v931_v9 = vadd.f32 %v930_v5, %v929_v63  ;;  %v979_v10 = vadd.f32 %v978_v6, %v977_v0 }
  0xee   :  { %v932_v11 = vpop.f32.mrf.mxu0  ;;  %v980_v12 = vpop.f32.mrf.mxu1 }
  0xef   :  { %v815_v13 = vpack.c.bf16 %v504_v7, %v503_v3  ;;  %v855_v14 = vpack.c.bf16 %v520_v8, %v519_v4  ;;  %v385_v15 = vadd.f32 %v931_v9, %v1266_v52  ;;  %v449_v16 = vadd.f32 %v979_v10, %v1266_v52 }
  0xf0   :  { %v933_v17 = vpop.f32.mrf.mxu0  ;;  %v981_v18 = vpop.f32.mrf.mxu1 }
  0xf1   :  { %816 = vst [vmem:[%s1351_s3] sm:$0xff] %v815_v13   ;;  %899 = vst [vmem:[%s1351_s3 + $0x40] sm:$0xff] %v855_v14   ;;  %v934_v19 = vadd.f32 %v933_v17, %v932_v11  ;;  %v982_v20 = vadd.f32 %v981_v18, %v980_v12  ;;  %v505_v25 = vmax.f32 %v385_v15, 0.0  ;;  %v521_v26 = vmax.f32 %v449_v16, 0.0 }
  0xf2   :  { %v935_v21 = vpop.f32.mrf.mxu0  ;;  %v983_v22 = vpop.f32.mrf.mxu1 }
  0xf3   :  { %v388_v23 = vadd.f32 %v934_v19, %v1266_v52  ;;  %v452_v24 = vadd.f32 %v982_v20, %v1266_v52 }
  0xf4   :  { %v936_v27 = vpop.f32.mrf.mxu0  ;;  %v984_v28 = vpop.f32.mrf.mxu1 }
  0xf5   :  { %v506_v29 = vmax.f32 %v388_v23, 0.0  ;;  %v522_v30 = vmax.f32 %v452_v24, 0.0  ;;  %v937_v31 = vadd.f32 %v936_v27, %v935_v21  ;;  %v985_v32 = vadd.f32 %v984_v28, %v983_v22 }
  0xf6   :  { %v938_v33 = vpop.f32.mrf.mxu0  ;;  %v986_v34 = vpop.f32.mrf.mxu1 }
  0xf7   :  { %v820_v35 = vpack.c.bf16 %v506_v29, %v505_v25  ;;  %v860_v36 = vpack.c.bf16 %v522_v30, %v521_v26  ;;  %v393_v37 = vadd.f32 %v937_v31, %v1266_v52  ;;  %v457_v38 = vadd.f32 %v985_v32, %v1266_v52 }
  0xf8   :  { %v939_v39 = vpop.f32.mrf.mxu0  ;;  %v987_v40 = vpop.f32.mrf.mxu1 }
  0xf9   :  { %892 = vst [vmem:[%s1351_s3 + $0x8] sm:$0xff] %v820_v35   ;;  %900 = vst [vmem:[%s1351_s3 + $0x48] sm:$0xff] %v860_v36   ;;  %v940_v41 = vadd.f32 %v939_v39, %v938_v33  ;;  %v988_v42 = vadd.f32 %v987_v40, %v986_v34  ;;  %v507_v47 = vmax.f32 %v393_v37, 0.0  ;;  %v523_v48 = vmax.f32 %v457_v38, 0.0 }
  0xfa   :  { %v941_v43 = vpop.f32.mrf.mxu0  ;;  %v989_v44 = vpop.f32.mrf.mxu1 }
  0xfb   :  { %v396_v45 = vadd.f32 %v940_v41, %v1266_v52  ;;  %v460_v46 = vadd.f32 %v988_v42, %v1266_v52 }
  0xfc   :  { %v942_v49 = vpop.f32.mrf.mxu0  ;;  %v990_v50 = vpop.f32.mrf.mxu1 }
  0xfd   :  { %v508_v51 = vmax.f32 %v396_v45, 0.0  ;;  %v524_v53 = vmax.f32 %v460_v46, 0.0  ;;  %v943_v54 = vadd.f32 %v942_v49, %v941_v43  ;;  %v991_v55 = vadd.f32 %v990_v50, %v989_v44 }
  0xfe   :  { %v944_v56 = vpop.f32.mrf.mxu0  ;;  %v992_v57 = vpop.f32.mrf.mxu1 }
  0xff   :  { %v825_v58 = vpack.c.bf16 %v508_v51, %v507_v47  ;;  %v865_v59 = vpack.c.bf16 %v524_v53, %v523_v48  ;;  %v401_v60 = vadd.f32 %v943_v54, %v1266_v52  ;;  %v465_v61 = vadd.f32 %v991_v55, %v1266_v52 }
 0x100   :  { %v945_v62 = vpop.f32.mrf.mxu0  ;;  %v993_v63 = vpop.f32.mrf.mxu1 }
 0x101   :  { %893 = vst [vmem:[%s1351_s3 + $0x10] sm:$0xff] %v825_v58   ;;  %901 = vst [vmem:[%s1351_s3 + $0x50] sm:$0xff] %v865_v59   ;;  %v946_v0 = vadd.f32 %v945_v62, %v944_v56  ;;  %v994_v1 = vadd.f32 %v993_v63, %v992_v57  ;;  %v509_v6 = vmax.f32 %v401_v60, 0.0  ;;  %v525_v7 = vmax.f32 %v465_v61, 0.0 }
 0x102   :  { %v947_v2 = vpop.f32.mrf.mxu0  ;;  %v995_v3 = vpop.f32.mrf.mxu1 }
 0x103   :  { %v404_v4 = vadd.f32 %v946_v0, %v1266_v52  ;;  %v468_v5 = vadd.f32 %v994_v1, %v1266_v52 }
 0x104   :  { %v948_v8 = vpop.f32.mrf.mxu0  ;;  %v996_v9 = vpop.f32.mrf.mxu1 }
 0x105   :  { %v510_v10 = vmax.f32 %v404_v4, 0.0  ;;  %v526_v11 = vmax.f32 %v468_v5, 0.0  ;;  %v949_v12 = vadd.f32 %v948_v8, %v947_v2  ;;  %v997_v13 = vadd.f32 %v996_v9, %v995_v3 }
 0x106   :  { %v950_v14 = vpop.f32.mrf.mxu0  ;;  %v998_v15 = vpop.f32.mrf.mxu1 }
 0x107   :  { %v830_v16 = vpack.c.bf16 %v510_v10, %v509_v6  ;;  %v870_v17 = vpack.c.bf16 %v526_v11, %v525_v7  ;;  %v409_v18 = vadd.f32 %v949_v12, %v1266_v52  ;;  %v473_v19 = vadd.f32 %v997_v13, %v1266_v52 }
 0x108   :  { %v951_v20 = vpop.f32.mrf.mxu0  ;;  %v999_v21 = vpop.f32.mrf.mxu1 }
 0x109   :  { %894 = vst [vmem:[%s1351_s3 + $0x18] sm:$0xff] %v830_v16   ;;  %902 = vst [vmem:[%s1351_s3 + $0x58] sm:$0xff] %v870_v17   ;;  %v952_v22 = vadd.f32 %v951_v20, %v950_v14  ;;  %v1000_v23 = vadd.f32 %v999_v21, %v998_v15  ;;  %v511_v28 = vmax.f32 %v409_v18, 0.0  ;;  %v527_v29 = vmax.f32 %v473_v19, 0.0 }
 0x10a   :  { %v953_v24 = vpop.f32.mrf.mxu0  ;;  %v1001_v25 = vpop.f32.mrf.mxu1 }
 0x10b   :  { %v412_v26 = vadd.f32 %v952_v22, %v1266_v52  ;;  %v476_v27 = vadd.f32 %v1000_v23, %v1266_v52 }
 0x10c   :  { %v954_v30 = vpop.f32.mrf.mxu0  ;;  %v1002_v31 = vpop.f32.mrf.mxu1 }
 0x10d   :  { %v512_v32 = vmax.f32 %v412_v26, 0.0  ;;  %v528_v33 = vmax.f32 %v476_v27, 0.0  ;;  %v955_v34 = vadd.f32 %v954_v30, %v953_v24  ;;  %v1003_v35 = vadd.f32 %v1002_v31, %v1001_v25 }
 0x10e   :  { %v956_v36 = vpop.f32.mrf.mxu0  ;;  %v1004_v37 = vpop.f32.mrf.mxu1 }
 0x10f   :  { %v835_v38 = vpack.c.bf16 %v512_v32, %v511_v28  ;;  %v875_v39 = vpack.c.bf16 %v528_v33, %v527_v29  ;;  %v417_v40 = vadd.f32 %v955_v34, %v1266_v52  ;;  %v481_v41 = vadd.f32 %v1003_v35, %v1266_v52 }
 0x110   :  { %v957_v42 = vpop.f32.mrf.mxu0  ;;  %v1005_v43 = vpop.f32.mrf.mxu1 }
 0x111   :  { %895 = vst [vmem:[%s1351_s3 + $0x20] sm:$0xff] %v835_v38   ;;  %903 = vst [vmem:[%s1351_s3 + $0x60] sm:$0xff] %v875_v39   ;;  %v958_v44 = vadd.f32 %v957_v42, %v956_v36  ;;  %v1006_v45 = vadd.f32 %v1005_v43, %v1004_v37  ;;  %v513_v50 = vmax.f32 %v417_v40, 0.0  ;;  %v529_v51 = vmax.f32 %v481_v41, 0.0 }
 0x112   :  { %v959_v46 = vpop.f32.mrf.mxu0  ;;  %v1007_v47 = vpop.f32.mrf.mxu1 }
 0x113   :  { %v420_v48 = vadd.f32 %v958_v44, %v1266_v52  ;;  %v484_v49 = vadd.f32 %v1006_v45, %v1266_v52 }
 0x114   :  { %v960_v53 = vpop.f32.mrf.mxu0  ;;  %v1008_v54 = vpop.f32.mrf.mxu1 }
 0x115   :  { %v514_v55 = vmax.f32 %v420_v48, 0.0  ;;  %v530_v56 = vmax.f32 %v484_v49, 0.0  ;;  %v961_v57 = vadd.f32 %v960_v53, %v959_v46  ;;  %v1009_v58 = vadd.f32 %v1008_v54, %v1007_v47 }
 0x116   :  { %v962_v59 = vpop.f32.mrf.mxu0  ;;  %v1010_v60 = vpop.f32.mrf.mxu1 }
 0x117   :  { %v840_v61 = vpack.c.bf16 %v514_v55, %v513_v50  ;;  %v880_v62 = vpack.c.bf16 %v530_v56, %v529_v51  ;;  %v425_v63 = vadd.f32 %v961_v57, %v1266_v52  ;;  %v489_v0 = vadd.f32 %v1009_v58, %v1266_v52 }
 0x118   :  { %v963_v1 = vpop.f32.mrf.mxu0  ;;  %v1011_v2 = vpop.f32.mrf.mxu1 }
 0x119   :  { %896 = vst [vmem:[%s1351_s3 + $0x28] sm:$0xff] %v840_v61   ;;  %904 = vst [vmem:[%s1351_s3 + $0x68] sm:$0xff] %v880_v62   ;;  %v964_v3 = vadd.f32 %v963_v1, %v962_v59  ;;  %v1012_v4 = vadd.f32 %v1011_v2, %v1010_v60  ;;  %v515_v9 = vmax.f32 %v425_v63, 0.0  ;;  %v531_v10 = vmax.f32 %v489_v0, 0.0 }
 0x11a   :  { %v965_v5 = vpop.f32.mrf.mxu0  ;;  %v1013_v6 = vpop.f32.mrf.mxu1 }
 0x11b   :  { %v428_v7 = vadd.f32 %v964_v3, %v1266_v52  ;;  %v492_v8 = vadd.f32 %v1012_v4, %v1266_v52 }
 0x11c   :  { %v966_v11 = vpop.f32.mrf.mxu0  ;;  %v1014_v12 = vpop.f32.mrf.mxu1 }
 0x11d   :  { %v516_v13 = vmax.f32 %v428_v7, 0.0  ;;  %v532_v14 = vmax.f32 %v492_v8, 0.0  ;;  %v967_v15 = vadd.f32 %v966_v11, %v965_v5  ;;  %v1015_v16 = vadd.f32 %v1014_v12, %v1013_v6 }
 0x11e   :  { %v968_v17 = vpop.f32.mrf.mxu0  ;;  %v1016_v18 = vpop.f32.mrf.mxu1 }
 0x11f   :  { %v845_v19 = vpack.c.bf16 %v516_v13, %v515_v9  ;;  %v885_v20 = vpack.c.bf16 %v532_v14, %v531_v10  ;;  %v433_v23 = vadd.f32 %v967_v15, %v1266_v52  ;;  %v497_v24 = vadd.f32 %v1015_v16, %v1266_v52 }
 0x120   :  { %v969_v21 = vpop.f32.mrf.mxu0  ;;  %v1017_v22 = vpop.f32.mrf.mxu1 }
 0x121   :  { %897 = vst [vmem:[%s1351_s3 + $0x30] sm:$0xff] %v845_v19   ;;  %905 = vst [vmem:[%s1351_s3 + $0x70] sm:$0xff] %v885_v20   ;;  %v970_v25 = vadd.f32 %v969_v21, %v968_v17  ;;  %v1018_v26 = vadd.f32 %v1017_v22, %v1016_v18  ;;  %v517_v29 = vmax.f32 %v433_v23, 0.0  ;;  %v533_v30 = vmax.f32 %v497_v24, 0.0 }
 0x123   :  { %v436_v27 = vadd.f32 %v970_v25, %v1266_v52  ;;  %v500_v28 = vadd.f32 %v1018_v26, %v1266_v52 }
 0x125   :  { %v518_v31 = vmax.f32 %v436_v27, 0.0  ;;  %v534_v32 = vmax.f32 %v500_v28, 0.0 }
 0x127   :  { %v850_v33 = vpack.c.bf16 %v518_v31, %v517_v29  ;;  %v890_v34 = vpack.c.bf16 %v534_v32, %v533_v30 }
 0x129   :  { %898 = vst [vmem:[%s1351_s3 + $0x38] sm:$0xff] %v850_v33   ;;  %906 = vst [vmem:[%s1351_s3 + $0x78] sm:$0xff] %v890_v34  }

// kernel: machine_forward.7
= control target key start
LH: loop header
LB: loop body
LE: loop exit
PB: predicated region body
PF: predicated region fallthrough
CT: control target
= control target key end

     0   :  { %s1025_s0 = inlined_call_operand.vmem [shape: bf16[256,256], index: 0, kind: input, shape index: {}]   ;;  %s1026_s1 = inlined_call_operand.vmem [shape: bf16[256,128], index: 1, kind: input, shape index: {}]   ;;  %s1027_s2 = inlined_call_operand.vmem [shape: f32[1,128], index: 2, kind: input, shape index: {}]   ;;  %s1028_s3 = inlined_call_operand.hbm [shape: f32[256,128], index: 3, kind: output, shape index: {}]  }
   0x1   :  { %v732_v0 = vld [vmem:[%s1026_s1 + $0x78] sm:$0xff]   ;;  %v734_v2 = vld [vmem:[%s1026_s1 + $0x70] sm:$0xff]   ;;  %v736_v4 = vld [vmem:[%s1026_s1 + $0x68] sm:$0xff]  }
   0x2   :  { %v733_v1 = vld [vmem:[%s1026_s1 + $0x38] sm:$0xff]   ;;  %601 = vmatprep.subr.bf16.mxu0 %v732_v0  ;;  %713 = vmatprep.subr.bf16.mxu1 %v732_v0  ;;  %v735_v3 = vld [vmem:[%s1026_s1 + $0x30] sm:$0xff]   ;;  %v737_v5 = vld [vmem:[%s1026_s1 + $0x28] sm:$0xff]  }
   0x3   :  { %602 = vmatpush3.bf16.msra.mxu0 %v733_v1  ;;  %721 = vmatpush3.bf16.msra.mxu1 %v733_v1  ;;  %v738_v6 = vld [vmem:[%s1026_s1 + $0x60] sm:$0xff]   ;;  %v740_v8 = vld [vmem:[%s1026_s1 + $0x58] sm:$0xff]   ;;  %v742_v10 = vld [vmem:[%s1026_s1 + $0x50] sm:$0xff]  }
   0x4   :  { %603 = vmatprep.subr.bf16.mxu0 %v734_v2  ;;  %714 = vmatprep.subr.bf16.mxu1 %v734_v2  ;;  %v739_v7 = vld [vmem:[%s1026_s1 + $0x20] sm:$0xff]   ;;  %v741_v9 = vld [vmem:[%s1026_s1 + $0x18] sm:$0xff]   ;;  %v743_v13 = vld [vmem:[%s1026_s1 + $0x10] sm:$0xff]  }
   0x5   :  { %v750_v11 = vld [vmem:[%s1025_s0 + $0x4] ss:$8 sps:$4 sm:$0xff]   ;;  %v748_v18 = vld [vmem:[%s1025_s0] ss:$8 sps:$4 sm:$0xff]   ;;  %v754_v20 = vld [vmem:[%s1025_s0 + $0x14] ss:$8 sps:$4 sm:$0xff]  }
   0x6   :  { %v753_v12 = vld [vmem:[%s1025_s0 + $0x84] ss:$8 sps:$4 sm:$0xff]   ;;  %375 = vmatprep.mubr.bf16.mxu0 %v750_v11  ;;  %v751_v19 = vld [vmem:[%s1025_s0 + $0x80] ss:$8 sps:$4 sm:$0xff]   ;;  %v756_v21 = vld [vmem:[%s1025_s0 + $0x94] ss:$8 sps:$4 sm:$0xff]  }
   0x7   :  { %604 = vmatpush3.bf16.msra.mxu0 %v735_v3  ;;  %722 = vmatpush3.bf16.msra.mxu1 %v735_v3  ;;  %v744_v14 = vld [vmem:[%s1026_s1 + $0x48] sm:$0xff]   ;;  %v746_v16 = vld [vmem:[%s1026_s1 + $0x40] sm:$0xff]  }
   0x8   :  { %605 = vmatprep.subr.bf16.mxu0 %v736_v4  ;;  %715 = vmatprep.subr.bf16.mxu1 %v736_v4  ;;  %v745_v15 = vld [vmem:[%s1026_s1 + $0x8] sm:$0xff]   ;;  %v747_v17 = vld [vmem:[%s1026_s1] sm:$0xff]  }
   0x9   :  { %439 = vmatprep.mubr.bf16.mxu1 %v753_v12 }
   0xb   :  { %606 = vmatpush3.bf16.msra.mxu0 %v737_v5  ;;  %723 = vmatpush3.bf16.msra.mxu1 %v737_v5 }
   0xc   :  { %607 = vmatprep.subr.bf16.mxu0 %v738_v6  ;;  %716 = vmatprep.subr.bf16.mxu1 %v738_v6 }
   0xf   :  { %608 = vmatpush3.bf16.msra.mxu0 %v739_v7  ;;  %724 = vmatpush3.bf16.msra.mxu1 %v739_v7 }
  0x10   :  { %609 = vmatprep.subr.bf16.mxu0 %v740_v8  ;;  %717 = vmatprep.subr.bf16.mxu1 %v740_v8 }
  0x13   :  { %610 = vmatpush3.bf16.msra.mxu0 %v741_v9  ;;  %725 = vmatpush3.bf16.msra.mxu1 %v741_v9 }
  0x14   :  { %611 = vmatprep.subr.bf16.mxu0 %v742_v10  ;;  %718 = vmatprep.subr.bf16.mxu1 %v742_v10 }
  0x17   :  { %612 = vmatpush3.bf16.msra.mxu0 %v743_v13  ;;  %726 = vmatpush3.bf16.msra.mxu1 %v743_v13 }
  0x18   :  { %613 = vmatprep.subr.bf16.mxu0 %v744_v14  ;;  %719 = vmatprep.subr.bf16.mxu1 %v744_v14 }
  0x1b   :  { %614 = vmatpush3.bf16.msra.mxu0 %v745_v15  ;;  %727 = vmatpush3.bf16.msra.mxu1 %v745_v15 }
  0x1c   :  { %615 = vmatprep.subr.bf16.mxu0 %v746_v16  ;;  %720 = vmatprep.subr.bf16.mxu1 %v746_v16 }
  0x1f   :  { %616 = vmatpush3.bf16.msra.mxu0 %v747_v17  ;;  %728 = vmatpush3.bf16.msra.mxu1 %v747_v17 }
  0x22   :  { %376 = vmatmul.mubr.bf16.vlgmr.msra.gmra.mxu0 %v748_v18  ;;  %440 = vmatmul.mubr.bf16.vlgmr.msra.gmra.mxu1 %v751_v19 }
  0x23   :  { %383 = vmatprep.mubr.bf16.mxu0 %v754_v20  ;;  %447 = vmatprep.mubr.bf16.mxu1 %v756_v21 }
  0x24   :  { %8 = vsyncpa [#allocation3], 0  ;;  %v758_v22 = vld [vmem:[%s1025_s0 + $0x10] ss:$8 sps:$4 sm:$0xff]   ;;  %v760_v24 = vld [vmem:[%s1025_s0 + $0x24] ss:$8 sps:$4 sm:$0xff]  }
  0x25   :  { %v759_v23 = vld [vmem:[%s1025_s0 + $0x90] ss:$8 sps:$4 sm:$0xff]   ;;  %v762_v25 = vld [vmem:[%s1025_s0 + $0xa4] ss:$8 sps:$4 sm:$0xff]   ;;  %v764_v26 = vld [vmem:[%s1025_s0 + $0x20] ss:$8 sps:$4 sm:$0xff]  }
  0x26   :  { %v765_v27 = vld [vmem:[%s1025_s0 + $0xa0] ss:$8 sps:$4 sm:$0xff]   ;;  %v766_v28 = vld [vmem:[%s1025_s0 + $0x34] ss:$8 sps:$4 sm:$0xff]   ;;  %v770_v30 = vld [vmem:[%s1025_s0 + $0x30] ss:$8 sps:$4 sm:$0xff]  }
  0x27   :  { %v768_v29 = vld [vmem:[%s1025_s0 + $0xb4] ss:$8 sps:$4 sm:$0xff]   ;;  %v771_v31 = vld [vmem:[%s1025_s0 + $0xb0] ss:$8 sps:$4 sm:$0xff]   ;;  %v772_v32 = vld [vmem:[%s1025_s0 + $0x44] ss:$8 sps:$4 sm:$0xff]  }
  0x28   :  { %v774_v33 = vld [vmem:[%s1025_s0 + $0xc4] ss:$8 sps:$4 sm:$0xff]   ;;  %v776_v34 = vld [vmem:[%s1025_s0 + $0x40] ss:$8 sps:$4 sm:$0xff]   ;;  %v778_v36 = vld [vmem:[%s1025_s0 + $0x54] ss:$8 sps:$4 sm:$0xff]  }
  0x29   :  { %v777_v35 = vld [vmem:[%s1025_s0 + $0xc0] ss:$8 sps:$4 sm:$0xff]   ;;  %v780_v37 = vld [vmem:[%s1025_s0 + $0xd4] ss:$8 sps:$4 sm:$0xff]   ;;  %v782_v38 = vld [vmem:[%s1025_s0 + $0x50] ss:$8 sps:$4 sm:$0xff]  }
  0x2a   :  { %384 = vmatmul.mubr.bf16.gmra.mxu0 %v758_v22  ;;  %448 = vmatmul.mubr.bf16.gmra.mxu1 %v759_v23  ;;  %v783_v39 = vld [vmem:[%s1025_s0 + $0xd0] ss:$8 sps:$4 sm:$0xff]   ;;  %v784_v40 = vld [vmem:[%s1025_s0 + $0x64] ss:$8 sps:$4 sm:$0xff]   ;;  %v788_v42 = vld [vmem:[%s1025_s0 + $0x60] ss:$8 sps:$4 sm:$0xff]  }
  0x2b   :  { %391 = vmatprep.mubr.bf16.mxu0 %v760_v24  ;;  %455 = vmatprep.mubr.bf16.mxu1 %v762_v25  ;;  %v786_v41 = vld [vmem:[%s1025_s0 + $0xe4] ss:$8 sps:$4 sm:$0xff]   ;;  %v789_v43 = vld [vmem:[%s1025_s0 + $0xe0] ss:$8 sps:$4 sm:$0xff]   ;;  %v790_v44 = vld [vmem:[%s1025_s0 + $0x74] ss:$8 sps:$4 sm:$0xff]  }
  0x2c   :  { %v792_v45 = vld [vmem:[%s1025_s0 + $0xf4] ss:$8 sps:$4 sm:$0xff]   ;;  %v794_v46 = vld [vmem:[%s1025_s0 + $0x70] ss:$8 sps:$4 sm:$0xff]   ;;  %v988_v50 = vld [vmem:[%s1027_s2] ss:$0 sm:$0xff] }
  0x2d   :  { %v795_v47 = vld [vmem:[%s1025_s0 + $0xf0] ss:$8 sps:$4 sm:$0xff]   ;;  %s818_s0 = smov [#allocation2]  }
  0x2e   :  { %s541_s2 = sshll.u32 %s818_s0, 4  ;;  %s542_s2 = int_to_ptr.vmem [resolvable:$true] %s541_s2 }
  0x2f   :  { %s796_s27 = scalar_lea.vmem %s542_s2, 4096  ;;  %p801_p1 = scmp.lt.s32.totalorder %s542_s2, %s542_s2 }
  0x30   :  { %p797_p0 = scmp.ne.s32.totalorder %s542_s2, %s796_s27  ;;  %p802_p2 = scmp.lt.s32.totalorder %s796_s27, %s796_s27 }
  0x32   :  { %392 = vmatmul.mubr.bf16.gmra.mxu0 %v764_v26  ;;  %456 = vmatmul.mubr.bf16.gmra.mxu1 %v765_v27  ;;  %p803_p3 = por %p802_p2, %p801_p1 }
  0x33   :  { %399 = vmatprep.mubr.bf16.mxu0 %v766_v28  ;;  %463 = vmatprep.mubr.bf16.mxu1 %v768_v29 }
  0x34   :  { %p804_p4 = pnand %p803_p3, %p797_p0 }
  0x3a   :  { %400 = vmatmul.mubr.bf16.gmra.mxu0 %v770_v30  ;;  %464 = vmatmul.mubr.bf16.gmra.mxu1 %v771_v31 }
  0x3b   :  { %407 = vmatprep.mubr.bf16.mxu0 %v772_v32  ;;  %471 = vmatprep.mubr.bf16.mxu1 %v774_v33 }
  0x42   :  { %408 = vmatmul.mubr.bf16.gmra.mxu0 %v776_v34  ;;  %472 = vmatmul.mubr.bf16.gmra.mxu1 %v777_v35 }
  0x43   :  { %415 = vmatprep.mubr.bf16.mxu0 %v778_v36  ;;  %479 = vmatprep.mubr.bf16.mxu1 %v780_v37 }
  0x4a   :  { %416 = vmatmul.mubr.bf16.gmra.mxu0 %v782_v38  ;;  %480 = vmatmul.mubr.bf16.gmra.mxu1 %v783_v39 }
  0x4b   :  { %423 = vmatprep.mubr.bf16.mxu0 %v784_v40  ;;  %487 = vmatprep.mubr.bf16.mxu1 %v786_v41 }
  0x52   :  { %424 = vmatmul.mubr.bf16.gmra.mxu0 %v788_v42  ;;  %488 = vmatmul.mubr.bf16.gmra.mxu1 %v789_v43 }
  0x53   :  { %431 = vmatprep.mubr.bf16.mxu0 %v790_v44  ;;  %495 = vmatprep.mubr.bf16.mxu1 %v792_v45 }
  0x5a   :  { %432 = vmatmul.mubr.bf16.gmra.mxu0 %v794_v46  ;;  %496 = vmatmul.mubr.bf16.gmra.mxu1 %v795_v47 }
  0xe2   :  { %v617_v48 = vpop.f32.mrf.mxu0  ;;  %v665_v49 = vpop.f32.mrf.mxu1 }
  0xe4   :  { %v618_v51 = vpop.f32.mrf.mxu0  ;;  %v666_v52 = vpop.f32.mrf.mxu1 }
  0xe5   :  { %v619_v53 = vadd.f32 %v618_v51, %v617_v48  ;;  %v667_v54 = vadd.f32 %v666_v52, %v665_v49 }
  0xe6   :  { %v620_v55 = vpop.f32.mrf.mxu0  ;;  %v668_v56 = vpop.f32.mrf.mxu1 }
  0xe7   :  { %v378_v57 = vadd.f32 %v619_v53, %v988_v50  ;;  %v442_v58 = vadd.f32 %v667_v54, %v988_v50 }
  0xe8   :  { %v621_v59 = vpop.f32.mrf.mxu0  ;;  %v669_v60 = vpop.f32.mrf.mxu1 }
  0xe9   :  { %504 = vst [vmem:[#allocation2] sm:$0xff] %v378_v57  ;;  %520 = vst [vmem:[#allocation2 + $0x80] sm:$0xff] %v442_v58  ;;  %v622_v61 = vadd.f32 %v621_v59, %v620_v55  ;;  %v670_v62 = vadd.f32 %v669_v60, %v668_v56 }
  0xea   :  { %v623_v63 = vpop.f32.mrf.mxu0  ;;  %v671_v0 = vpop.f32.mrf.mxu1 }
  0xeb   :  { %v381_v1 = vadd.f32 %v622_v61, %v988_v50  ;;  %v445_v2 = vadd.f32 %v670_v62, %v988_v50 }
  0xec   :  { %v624_v3 = vpop.f32.mrf.mxu0  ;;  %v672_v4 = vpop.f32.mrf.mxu1 }
  0xed   :  { %505 = vst [vmem:[#allocation2 + $0x8] sm:$0xff] %v381_v1  ;;  %521 = vst [vmem:[#allocation2 + $0x88] sm:$0xff] %v445_v2  ;;  %v625_v5 = vadd.f32 %v624_v3, %v623_v63  ;;  %v673_v6 = vadd.f32 %v672_v4, %v671_v0 }
  0xee   :  { %v626_v7 = vpop.f32.mrf.mxu0  ;;  %v674_v8 = vpop.f32.mrf.mxu1 }
  0xef   :  { %v386_v9 = vadd.f32 %v625_v5, %v988_v50  ;;  %v450_v10 = vadd.f32 %v673_v6, %v988_v50 }
  0xf0   :  { %v627_v11 = vpop.f32.mrf.mxu0  ;;  %v675_v12 = vpop.f32.mrf.mxu1 }
  0xf1   :  { %506 = vst [vmem:[#allocation2 + $0x10] sm:$0xff] %v386_v9  ;;  %522 = vst [vmem:[#allocation2 + $0x90] sm:$0xff] %v450_v10  ;;  %v628_v13 = vadd.f32 %v627_v11, %v626_v7  ;;  %v676_v14 = vadd.f32 %v675_v12, %v674_v8 }
  0xf2   :  { %v629_v15 = vpop.f32.mrf.mxu0  ;;  %v677_v16 = vpop.f32.mrf.mxu1 }
  0xf3   :  { %v389_v17 = vadd.f32 %v628_v13, %v988_v50  ;;  %v453_v18 = vadd.f32 %v676_v14, %v988_v50 }
  0xf4   :  { %v630_v19 = vpop.f32.mrf.mxu0  ;;  %v678_v20 = vpop.f32.mrf.mxu1 }
  0xf5   :  { %507 = vst [vmem:[#allocation2 + $0x18] sm:$0xff] %v389_v17  ;;  %523 = vst [vmem:[#allocation2 + $0x98] sm:$0xff] %v453_v18  ;;  %v631_v21 = vadd.f32 %v630_v19, %v629_v15  ;;  %v679_v22 = vadd.f32 %v678_v20, %v677_v16 }
  0xf6   :  { %v632_v23 = vpop.f32.mrf.mxu0  ;;  %v680_v24 = vpop.f32.mrf.mxu1 }
  0xf7   :  { %v394_v25 = vadd.f32 %v631_v21, %v988_v50  ;;  %v458_v26 = vadd.f32 %v679_v22, %v988_v50 }
  0xf8   :  { %v633_v27 = vpop.f32.mrf.mxu0  ;;  %v681_v28 = vpop.f32.mrf.mxu1 }
  0xf9   :  { %508 = vst [vmem:[#allocation2 + $0x20] sm:$0xff] %v394_v25  ;;  %524 = vst [vmem:[#allocation2 + $0xa0] sm:$0xff] %v458_v26  ;;  %v634_v29 = vadd.f32 %v633_v27, %v632_v23  ;;  %v682_v30 = vadd.f32 %v681_v28, %v680_v24 }
  0xfa   :  { %v635_v31 = vpop.f32.mrf.mxu0  ;;  %v683_v32 = vpop.f32.mrf.mxu1 }
  0xfb   :  { %v397_v33 = vadd.f32 %v634_v29, %v988_v50  ;;  %v461_v34 = vadd.f32 %v682_v30, %v988_v50 }
  0xfc   :  { %v636_v35 = vpop.f32.mrf.mxu0  ;;  %v684_v36 = vpop.f32.mrf.mxu1 }
  0xfd   :  { %509 = vst [vmem:[#allocation2 + $0x28] sm:$0xff] %v397_v33  ;;  %525 = vst [vmem:[#allocation2 + $0xa8] sm:$0xff] %v461_v34  ;;  %v637_v37 = vadd.f32 %v636_v35, %v635_v31  ;;  %v685_v38 = vadd.f32 %v684_v36, %v683_v32 }
  0xfe   :  { %v638_v39 = vpop.f32.mrf.mxu0  ;;  %v686_v40 = vpop.f32.mrf.mxu1 }
  0xff   :  { %v402_v41 = vadd.f32 %v637_v37, %v988_v50  ;;  %v466_v42 = vadd.f32 %v685_v38, %v988_v50 }
 0x100   :  { %v639_v43 = vpop.f32.mrf.mxu0  ;;  %v687_v44 = vpop.f32.mrf.mxu1 }
 0x101   :  { %510 = vst [vmem:[#allocation2 + $0x30] sm:$0xff] %v402_v41  ;;  %526 = vst [vmem:[#allocation2 + $0xb0] sm:$0xff] %v466_v42  ;;  %v640_v45 = vadd.f32 %v639_v43, %v638_v39  ;;  %v688_v46 = vadd.f32 %v687_v44, %v686_v40 }
 0x102   :  { %v641_v47 = vpop.f32.mrf.mxu0  ;;  %v689_v48 = vpop.f32.mrf.mxu1 }
 0x103   :  { %v405_v49 = vadd.f32 %v640_v45, %v988_v50  ;;  %v469_v51 = vadd.f32 %v688_v46, %v988_v50 }
 0x104   :  { %v642_v52 = vpop.f32.mrf.mxu0  ;;  %v690_v53 = vpop.f32.mrf.mxu1 }
 0x105   :  { %511 = vst [vmem:[#allocation2 + $0x38] sm:$0xff] %v405_v49  ;;  %527 = vst [vmem:[#allocation2 + $0xb8] sm:$0xff] %v469_v51  ;;  %v643_v54 = vadd.f32 %v642_v52, %v641_v47  ;;  %v691_v55 = vadd.f32 %v690_v53, %v689_v48 }
 0x106   :  { %v644_v56 = vpop.f32.mrf.mxu0  ;;  %v692_v57 = vpop.f32.mrf.mxu1 }
 0x107   :  { %v410_v58 = vadd.f32 %v643_v54, %v988_v50  ;;  %v474_v59 = vadd.f32 %v691_v55, %v988_v50 }
 0x108   :  { %v645_v60 = vpop.f32.mrf.mxu0  ;;  %v693_v61 = vpop.f32.mrf.mxu1 }
 0x109   :  { %512 = vst [vmem:[#allocation2 + $0x40] sm:$0xff] %v410_v58  ;;  %528 = vst [vmem:[#allocation2 + $0xc0] sm:$0xff] %v474_v59  ;;  %v646_v62 = vadd.f32 %v645_v60, %v644_v56  ;;  %v694_v63 = vadd.f32 %v693_v61, %v692_v57 }
 0x10a   :  { %v647_v0 = vpop.f32.mrf.mxu0  ;;  %v695_v1 = vpop.f32.mrf.mxu1 }
 0x10b   :  { %v413_v2 = vadd.f32 %v646_v62, %v988_v50  ;;  %v477_v3 = vadd.f32 %v694_v63, %v988_v50 }
 0x10c   :  { %v648_v4 = vpop.f32.mrf.mxu0  ;;  %v696_v5 = vpop.f32.mrf.mxu1 }
 0x10d   :  { %513 = vst [vmem:[#allocation2 + $0x48] sm:$0xff] %v413_v2  ;;  %529 = vst [vmem:[#allocation2 + $0xc8] sm:$0xff] %v477_v3  ;;  %v649_v6 = vadd.f32 %v648_v4, %v647_v0  ;;  %v697_v7 = vadd.f32 %v696_v5, %v695_v1 }
 0x10e   :  { %v650_v8 = vpop.f32.mrf.mxu0  ;;  %v698_v9 = vpop.f32.mrf.mxu1 }
 0x10f   :  { %v418_v10 = vadd.f32 %v649_v6, %v988_v50  ;;  %v482_v11 = vadd.f32 %v697_v7, %v988_v50 }
 0x110   :  { %v651_v12 = vpop.f32.mrf.mxu0  ;;  %v699_v13 = vpop.f32.mrf.mxu1 }
 0x111   :  { %514 = vst [vmem:[#allocation2 + $0x50] sm:$0xff] %v418_v10  ;;  %530 = vst [vmem:[#allocation2 + $0xd0] sm:$0xff] %v482_v11  ;;  %v652_v14 = vadd.f32 %v651_v12, %v650_v8  ;;  %v700_v15 = vadd.f32 %v699_v13, %v698_v9 }
 0x112   :  { %v653_v16 = vpop.f32.mrf.mxu0  ;;  %v701_v17 = vpop.f32.mrf.mxu1 }
 0x113   :  { %v421_v18 = vadd.f32 %v652_v14, %v988_v50  ;;  %v485_v19 = vadd.f32 %v700_v15, %v988_v50 }
 0x114   :  { %v654_v20 = vpop.f32.mrf.mxu0  ;;  %v702_v21 = vpop.f32.mrf.mxu1 }
 0x115   :  { %515 = vst [vmem:[#allocation2 + $0x58] sm:$0xff] %v421_v18  ;;  %531 = vst [vmem:[#allocation2 + $0xd8] sm:$0xff] %v485_v19  ;;  %v655_v22 = vadd.f32 %v654_v20, %v653_v16  ;;  %v703_v23 = vadd.f32 %v702_v21, %v701_v17 }
 0x116   :  { %v656_v24 = vpop.f32.mrf.mxu0  ;;  %v704_v25 = vpop.f32.mrf.mxu1 }
 0x117   :  { %v426_v26 = vadd.f32 %v655_v22, %v988_v50  ;;  %v490_v27 = vadd.f32 %v703_v23, %v988_v50 }
 0x118   :  { %v657_v28 = vpop.f32.mrf.mxu0  ;;  %v705_v29 = vpop.f32.mrf.mxu1 }
 0x119   :  { %516 = vst [vmem:[#allocation2 + $0x60] sm:$0xff] %v426_v26  ;;  %532 = vst [vmem:[#allocation2 + $0xe0] sm:$0xff] %v490_v27  ;;  %v658_v30 = vadd.f32 %v657_v28, %v656_v24  ;;  %v706_v31 = vadd.f32 %v705_v29, %v704_v25 }
 0x11a   :  { %v659_v32 = vpop.f32.mrf.mxu0  ;;  %v707_v33 = vpop.f32.mrf.mxu1 }
 0x11b   :  { %v429_v34 = vadd.f32 %v658_v30, %v988_v50  ;;  %v493_v35 = vadd.f32 %v706_v31, %v988_v50 }
 0x11c   :  { %v660_v36 = vpop.f32.mrf.mxu0  ;;  %v708_v37 = vpop.f32.mrf.mxu1 }
 0x11d   :  { %517 = vst [vmem:[#allocation2 + $0x68] sm:$0xff] %v429_v34  ;;  %533 = vst [vmem:[#allocation2 + $0xe8] sm:$0xff] %v493_v35  ;;  %v661_v38 = vadd.f32 %v660_v36, %v659_v32  ;;  %v709_v39 = vadd.f32 %v708_v37, %v707_v33 }
 0x11e   :  { %v662_v40 = vpop.f32.mrf.mxu0  ;;  %v710_v41 = vpop.f32.mrf.mxu1 }
 0x11f   :  { %v434_v42 = vadd.f32 %v661_v38, %v988_v50  ;;  %v498_v43 = vadd.f32 %v709_v39, %v988_v50 }
 0x120   :  { %v663_v44 = vpop.f32.mrf.mxu0  ;;  %v711_v45 = vpop.f32.mrf.mxu1 }
 0x121   :  { %518 = vst [vmem:[#allocation2 + $0x70] sm:$0xff] %v434_v42  ;;  %534 = vst [vmem:[#allocation2 + $0xf0] sm:$0xff] %v498_v43  ;;  %v664_v46 = vadd.f32 %v663_v44, %v662_v40  ;;  %v712_v47 = vadd.f32 %v711_v45, %v710_v41 }
 0x123   :  { %v437_v48 = vadd.f32 %v664_v46, %v988_v50  ;;  %v501_v49 = vadd.f32 %v712_v47, %v988_v50 }
 0x125   :  { %519 = vst [vmem:[#allocation2 + $0x78] sm:$0xff] %v437_v48  ;;  %535 = vst [vmem:[#allocation2 + $0xf8] sm:$0xff] %v501_v49 }
 0x126   :  { %807 = shalt.err (!%p804_p4)
}
 0x127   :  { %s819_s28 = smov 128   ;;  %s820_s1 = smov 8  }
 0x128   :  { %547 = dma.vmem_to_hbm [thread:$0]  %s542_s2, 4096, %s1028_s3, [#allocation3], %s819_s28, %s819_s28, %s820_s1  }
 0x129   :  { %816 = dma.done.wait [#allocation3], 4096  }
 0x12a   :  { %817 = vsyncadd [#allocation3], 4294963200 }
 0x12b   :  { %551 = vsyncpa [#allocation3], 1 }

// kernel: machine_forward.6
= control target key start
LH: loop header
LB: loop body
LE: loop exit
PB: predicated region body
PF: predicated region fallthrough
CT: control target
= control target key end

     0   :  { %s2861_s1 = inlined_call_operand.vmem [shape: bf16[640,128], index: 1, kind: input, shape index: {}]   ;;  %s2862_s0 = inlined_call_operand.vmem [shape: bf16[256,640], index: 0, kind: input, shape index: {}]   ;;  %s2863_s2 = inlined_call_operand.vmem [shape: bf16[256,128], index: 2, kind: output, shape index: {}]  }
   0x1   :  { %v2082_v0 = vld [vmem:[%s2861_s1 + $0x78] sm:$0xff]   ;;  %v2084_v2 = vld [vmem:[%s2861_s1 + $0x70] sm:$0xff]   ;;  %v2086_v4 = vld [vmem:[%s2861_s1 + $0x68] sm:$0xff]  }
   0x2   :  { %v2083_v1 = vld [vmem:[%s2861_s1 + $0x38] sm:$0xff]   ;;  %1770 = vmatprep.subr.bf16.mxu0 %v2082_v0  ;;  %2066 = vmatprep.subr.bf16.mxu1 %v2082_v0  ;;  %v2085_v3 = vld [vmem:[%s2861_s1 + $0x30] sm:$0xff]   ;;  %v2087_v5 = vld [vmem:[%s2861_s1 + $0x28] sm:$0xff]  }
   0x3   :  { %1771 = vmatpush3.bf16.msra.mxu0 %v2083_v1  ;;  %2074 = vmatpush3.bf16.msra.mxu1 %v2083_v1  ;;  %v2088_v6 = vld [vmem:[%s2861_s1 + $0x60] sm:$0xff]   ;;  %v2090_v8 = vld [vmem:[%s2861_s1 + $0x58] sm:$0xff]   ;;  %v2092_v10 = vld [vmem:[%s2861_s1 + $0x50] sm:$0xff]  }
   0x4   :  { %1772 = vmatprep.subr.bf16.mxu0 %v2084_v2  ;;  %2067 = vmatprep.subr.bf16.mxu1 %v2084_v2  ;;  %v2089_v7 = vld [vmem:[%s2861_s1 + $0x20] sm:$0xff]   ;;  %v2091_v9 = vld [vmem:[%s2861_s1 + $0x18] sm:$0xff]   ;;  %v2093_v13 = vld [vmem:[%s2861_s1 + $0x10] sm:$0xff]  }
   0x5   :  { %v2100_v11 = vld [vmem:[%s2862_s0 + $0x4] ss:$20 sps:$4 sm:$0xff]   ;;  %v2094_v14 = vld [vmem:[%s2861_s1 + $0x48] sm:$0xff]   ;;  %v2098_v20 = vld [vmem:[%s2862_s0] ss:$20 sps:$4 sm:$0xff]  }
   0x6   :  { %v2103_v12 = vld [vmem:[%s2862_s0 + $0x1e4] ss:$20 sps:$4 sm:$0xff]   ;;  %876 = vmatprep.mubr.bf16.mxu0 %v2100_v11  ;;  %v2095_v15 = vld [vmem:[%s2861_s1 + $0x8] sm:$0xff]   ;;  %v2101_v21 = vld [vmem:[%s2862_s0 + $0x1e0] ss:$20 sps:$4 sm:$0xff]  }
   0x7   :  { %1773 = vmatpush3.bf16.msra.mxu0 %v2085_v3  ;;  %2075 = vmatpush3.bf16.msra.mxu1 %v2085_v3  ;;  %v2096_v16 = vld [vmem:[%s2861_s1 + $0x40] sm:$0xff]   ;;  %v2104_v18 = vld [vmem:[%s2861_s1 + $0xf8] sm:$0xff]   ;;  %v2106_v23 = vld [vmem:[%s2861_s1 + $0xf0] sm:$0xff]  }
   0x8   :  { %1774 = vmatprep.subr.bf16.mxu0 %v2086_v4  ;;  %2068 = vmatprep.subr.bf16.mxu1 %v2086_v4  ;;  %v2097_v17 = vld [vmem:[%s2861_s1] sm:$0xff]   ;;  %v2107_v19 = vld [vmem:[%s2861_s1 + $0x138] sm:$0xff]   ;;  %v2126_v26 = vld [vmem:[%s2861_s1 + $0x130] sm:$0xff]  }
   0x9   :  { %972 = vmatprep.mubr.bf16.mxu1 %v2103_v12  ;;  %v2105_v22 = vld [vmem:[%s2861_s1 + $0xb8] sm:$0xff]   ;;  %v2109_v24 = vld [vmem:[%s2862_s0 + $0x2c] ss:$20 sps:$4 sm:$0xff]   ;;  %v2108_v27 = vld [vmem:[%s2861_s1 + $0xb0] sm:$0xff]  }
   0xa   :  { %v2111_v25 = vld [vmem:[%s2862_s0 + $0x20c] ss:$20 sps:$4 sm:$0xff]   ;;  %v2113_v28 = vld [vmem:[%s2862_s0 + $0x28] ss:$20 sps:$4 sm:$0xff]   ;;  %v2123_v37 = vld [vmem:[%s2862_s0 + $0x50] ss:$20 sps:$4 sm:$0xff]  }
   0xb   :  { %1775 = vmatpush3.bf16.msra.mxu0 %v2087_v5  ;;  %2076 = vmatpush3.bf16.msra.mxu1 %v2087_v5  ;;  %v2115_v29 = vld [vmem:[%s2861_s1 + $0xe8] sm:$0xff]   ;;  %v2117_v33 = vld [vmem:[%s2861_s1 + $0xe0] sm:$0xff]   ;;  %v2125_v36 = vld [vmem:[%s2861_s1 + $0xd8] sm:$0xff]  }
   0xc   :  { %1776 = vmatprep.subr.bf16.mxu0 %v2088_v6  ;;  %2069 = vmatprep.subr.bf16.mxu1 %v2088_v6  ;;  %v2114_v30 = vld [vmem:[%s2862_s0 + $0x208] ss:$20 sps:$4 sm:$0xff]   ;;  %v2118_v35 = vld [vmem:[%s2861_s1 + $0xa0] sm:$0xff]   ;;  %v2128_v41 = vld [vmem:[%s2861_s1 + $0xd0] sm:$0xff]  }
   0xd   :  { %v2116_v31 = vld [vmem:[%s2861_s1 + $0xa8] sm:$0xff]   ;;  %v2124_v39 = vld [vmem:[%s2862_s0 + $0x230] ss:$20 sps:$4 sm:$0xff]   ;;  %v2127_v40 = vld [vmem:[%s2861_s1 + $0x98] sm:$0xff]  }
   0xe   :  { %v2119_v32 = vld [vmem:[%s2862_s0 + $0x54] ss:$20 sps:$4 sm:$0xff]   ;;  %v2130_v42 = vld [vmem:[%s2862_s0 + $0x7c] ss:$20 sps:$4 sm:$0xff]   ;;  %v2153_v45 = vld [vmem:[%s2861_s1 + $0x120] sm:$0xff]  }
   0xf   :  { %1777 = vmatpush3.bf16.msra.mxu0 %v2089_v7  ;;  %2077 = vmatpush3.bf16.msra.mxu1 %v2089_v7  ;;  %v2121_v34 = vld [vmem:[%s2862_s0 + $0x234] ss:$20 sps:$4 sm:$0xff]   ;;  %v2132_v43 = vld [vmem:[%s2862_s0 + $0x25c] ss:$20 sps:$4 sm:$0xff]   ;;  %v2134_v46 = vld [vmem:[%s2862_s0 + $0x78] ss:$20 sps:$4 sm:$0xff]  }
  0x10   :  { %1778 = vmatprep.subr.bf16.mxu0 %v2090_v8  ;;  %2070 = vmatprep.subr.bf16.mxu1 %v2090_v8  ;;  %v2139_v38 = vld [vmem:[%s2861_s1 + $0x128] sm:$0xff]   ;;  %v2129_v44 = vld [vmem:[%s2861_s1 + $0x90] sm:$0xff]   ;;  %v2138_v50 = vld [vmem:[%s2861_s1 + $0xc0] sm:$0xff]  }
  0x11   :  { %v2135_v47 = vld [vmem:[%s2862_s0 + $0x258] ss:$20 sps:$4 sm:$0xff]   ;;  %v2140_v54 = vld [vmem:[%s2861_s1 + $0x80] sm:$0xff]   ;;  %v2143_v55 = vld [vmem:[%s2862_s0 + $0x8] ss:$20 sps:$4 sm:$0xff]  }
  0x12   :  { %v2136_v48 = vld [vmem:[%s2861_s1 + $0xc8] sm:$0xff]   ;;  %v2141_v51 = vld [vmem:[%s2862_s0 + $0xa4] ss:$20 sps:$4 sm:$0xff]   ;;  %v2146_v56 = vld [vmem:[%s2862_s0 + $0xa0] ss:$20 sps:$4 sm:$0xff]  }
  0x13   :  { %1779 = vmatpush3.bf16.msra.mxu0 %v2091_v9  ;;  %2078 = vmatpush3.bf16.msra.mxu1 %v2091_v9  ;;  %v2137_v49 = vld [vmem:[%s2861_s1 + $0x88] sm:$0xff]   ;;  %v2160_v52 = vld [vmem:[%s2861_s1 + $0x118] sm:$0xff]   ;;  %v2173_v57 = vld [vmem:[%s2861_s1 + $0x110] sm:$0xff]  }
  0x14   :  { %1780 = vmatprep.subr.bf16.mxu0 %v2092_v10  ;;  %2071 = vmatprep.subr.bf16.mxu1 %v2092_v10  ;;  %v2145_v53 = vld [vmem:[%s2862_s0 + $0xc] ss:$20 sps:$4 sm:$0xff]   ;;  %v2149_v59 = vld [vmem:[%s2862_s0 + $0x34] ss:$20 sps:$4 sm:$0xff]   ;;  %v2152_v62 = vld [vmem:[%s2862_s0 + $0x30] ss:$20 sps:$4 sm:$0xff]  }
  0x15   :  { %v2147_v58 = vld [vmem:[%s2862_s0 + $0xcc] ss:$20 sps:$4 sm:$0xff]   ;;  %v2151_v61 = vld [vmem:[%s2862_s0 + $0xc8] ss:$20 sps:$4 sm:$0xff]   ;;  %v2158_v2 = vld [vmem:[%s2862_s0 + $0xf0] ss:$20 sps:$4 sm:$0xff]  }
  0x16   :  { %v2180_v60 = vld [vmem:[%s2861_s1 + $0x108] sm:$0xff]   ;;  %v2156_v0 = vld [vmem:[%s2862_s0 + $0x5c] ss:$20 sps:$4 sm:$0xff]   ;;  %v2193_v1 = vld [vmem:[%s2861_s1 + $0x100] sm:$0xff]  }
  0x17   :  { %1781 = vmatpush3.bf16.msra.mxu0 %v2093_v13  ;;  %2079 = vmatpush3.bf16.msra.mxu1 %v2093_v13  ;;  %v2154_v63 = vld [vmem:[%s2862_s0 + $0xf4] ss:$20 sps:$4 sm:$0xff]   ;;  %v2159_v3 = vld [vmem:[%s2862_s0 + $0x58] ss:$20 sps:$4 sm:$0xff]   ;;  %v2161_v4 = vld [vmem:[%s2862_s0 + $0x11c] ss:$20 sps:$4 sm:$0xff]  }
  0x18   :  { %1782 = vmatprep.subr.bf16.mxu0 %v2094_v14  ;;  %2072 = vmatprep.subr.bf16.mxu1 %v2094_v14  ;;  %v2163_v5 = vld [vmem:[%s2862_s0 + $0x84] ss:$20 sps:$4 sm:$0xff]   ;;  %v2166_v7 = vld [vmem:[%s2862_s0 + $0x80] ss:$20 sps:$4 sm:$0xff]   ;;  %v2172_v11 = vld [vmem:[%s2862_s0 + $0xa8] ss:$20 sps:$4 sm:$0xff]  }
  0x19   :  { %v2165_v6 = vld [vmem:[%s2862_s0 + $0x118] ss:$20 sps:$4 sm:$0xff]   ;;  %v2171_v10 = vld [vmem:[%s2862_s0 + $0x140] ss:$20 sps:$4 sm:$0xff]   ;;  %v2178_v14 = vld [vmem:[%s2862_s0 + $0x168] ss:$20 sps:$4 sm:$0xff]  }
  0x1a   :  { %v2167_v8 = vld [vmem:[%s2862_s0 + $0x144] ss:$20 sps:$4 sm:$0xff]   ;;  %v2169_v9 = vld [vmem:[%s2862_s0 + $0xac] ss:$20 sps:$4 sm:$0xff]   ;;  %v2176_v13 = vld [vmem:[%s2862_s0 + $0xd4] ss:$20 sps:$4 sm:$0xff]  }
  0x1b   :  { %1783 = vmatpush3.bf16.msra.mxu0 %v2095_v15  ;;  %2080 = vmatpush3.bf16.msra.mxu1 %v2095_v15  ;;  %v2174_v12 = vld [vmem:[%s2862_s0 + $0x16c] ss:$20 sps:$4 sm:$0xff]   ;;  %v2179_v15 = vld [vmem:[%s2862_s0 + $0xd0] ss:$20 sps:$4 sm:$0xff]  }
  0x1c   :  { %1784 = vmatprep.subr.bf16.mxu0 %v2096_v16  ;;  %2073 = vmatprep.subr.bf16.mxu1 %v2096_v16  ;;  %v2181_v16 = vld [vmem:[%s2862_s0 + $0x194] ss:$20 sps:$4 sm:$0xff]  }
  0x1f   :  { %1785 = vmatpush3.bf16.msra.mxu0 %v2097_v17  ;;  %2081 = vmatpush3.bf16.msra.mxu1 %v2097_v17  ;;  %v2183_v17 = vld [vmem:[%s2862_s0 + $0xfc] ss:$20 sps:$4 sm:$0xff]  }
  0x20   :  { %1882 = vmatprep.subr.bf16.mxu1 %v2104_v18  ;;  %2018 = vmatprep.subr.bf16.mxu0 %v2107_v19  ;;  %v2185_v18 = vld [vmem:[%s2862_s0 + $0x190] ss:$20 sps:$4 sm:$0xff]  }
  0x22   :  { %877 = vmatmul.mubr.bf16.vlgmr.msra.gmra.mxu0 %v2098_v20  ;;  %973 = vmatmul.mubr.bf16.vlgmr.msra.gmra.mxu1 %v2101_v21  ;;  %v2187_v20 = vld [vmem:[%s2862_s0 + $0x1bc] ss:$20 sps:$4 sm:$0xff]   ;;  %v2189_v21 = vld [vmem:[%s2862_s0 + $0x124] ss:$20 sps:$4 sm:$0xff]  }
  0x23   :  { %1883 = vmatpush3.bf16.msra.mxu1 %v2105_v22  ;;  %2019 = vmatpush3.bf16.msra.mxu0 %v2107_v19  ;;  %v2186_v19 = vld [vmem:[%s2862_s0 + $0xf8] ss:$20 sps:$4 sm:$0xff]  }
  0x24   :  { %1884 = vmatprep.subr.bf16.mxu1 %v2106_v23  ;;  %884 = vmatprep.mubr.bf16.mxu0 %v2109_v24  ;;  %v2191_v22 = vld [vmem:[%s2862_s0 + $0x1b8] ss:$20 sps:$4 sm:$0xff]   ;;  %v2192_v23 = vld [vmem:[%s2862_s0 + $0x120] ss:$20 sps:$4 sm:$0xff]  }
  0x25   :  { %980 = vmatprep.mubr.bf16.mxu1 %v2111_v25  ;;  %2020 = vmatprep.subr.bf16.mxu0 %v2126_v26  ;;  %v2194_v24 = vld [vmem:[%s2862_s0 + $0x14c] ss:$20 sps:$4 sm:$0xff]   ;;  %v2196_v25 = vld [vmem:[%s2862_s0 + $0x10] ss:$20 sps:$4 sm:$0xff]  }
  0x27   :  { %1885 = vmatpush3.bf16.msra.mxu1 %v2108_v27  ;;  %2021 = vmatpush3.bf16.msra.mxu0 %v2126_v26  ;;  %v2197_v26 = vld [vmem:[%s2862_s0 + $0x148] ss:$20 sps:$4 sm:$0xff]   ;;  %v2198_v27 = vld [vmem:[%s2862_s0 + $0x38] ss:$20 sps:$4 sm:$0xff]  }
  0x28   :  { %1886 = vmatprep.subr.bf16.mxu1 %v2115_v29  ;;  %2022 = vmatprep.subr.bf16.mxu0 %v2139_v38  ;;  %v2201_v29 = vld [vmem:[%s2862_s0 + $0x60] ss:$20 sps:$4 sm:$0xff]  }
  0x2a   :  { %885 = vmatmul.mubr.bf16.gmra.mxu0 %v2113_v28  ;;  %981 = vmatmul.mubr.bf16.gmra.mxu1 %v2114_v30  ;;  %v2199_v28 = vld [vmem:[%s2862_s0 + $0x174] ss:$20 sps:$4 sm:$0xff]   ;;  %v2202_v30 = vld [vmem:[%s2862_s0 + $0x170] ss:$20 sps:$4 sm:$0xff]  }
  0x2b   :  { %1887 = vmatpush3.bf16.msra.mxu1 %v2116_v31  ;;  %892 = vmatprep.mubr.bf16.mxu0 %v2119_v32  ;;  %v2203_v31 = vld [vmem:[%s2862_s0 + $0x88] ss:$20 sps:$4 sm:$0xff]  }
  0x2c   :  { %1888 = vmatprep.subr.bf16.mxu1 %v2117_v33  ;;  %988 = vmatprep.mubr.bf16.mxu1 %v2121_v34  ;;  %v2204_v32 = vld [vmem:[%s2862_s0 + $0x19c] ss:$20 sps:$4 sm:$0xff]   ;;  %v2207_v34 = vld [vmem:[%s2862_s0 + $0x198] ss:$20 sps:$4 sm:$0xff]  }
  0x2d   :  { %2023 = vmatpush3.bf16.msra.mxu0 %v2139_v38  ;;  %v2206_v33 = vld [vmem:[%s2862_s0 + $0xb0] ss:$20 sps:$4 sm:$0xff]   ;;  %v2212_v38 = vld [vmem:[%s2862_s0 + $0x1c0] ss:$20 sps:$4 sm:$0xff]  }
  0x2e   :  { %2024 = vmatprep.subr.bf16.mxu0 %v2153_v45 }
  0x2f   :  { %1889 = vmatpush3.bf16.msra.mxu1 %v2118_v35  ;;  %v2208_v35 = vld [vmem:[%s2862_s0 + $0xd8] ss:$20 sps:$4 sm:$0xff]  }
  0x30   :  { %1890 = vmatprep.subr.bf16.mxu1 %v2125_v36  ;;  %v2209_v36 = vld [vmem:[%s2862_s0 + $0x1c4] ss:$20 sps:$4 sm:$0xff]  }
  0x31   :  { %2025 = vmatpush3.bf16.msra.mxu0 %v2153_v45  ;;  %v2221_v45 = vld [vmem:[%s2862_s0 + $0x1a0] ss:$20 sps:$4 sm:$0xff]  }
  0x32   :  { %893 = vmatmul.mubr.bf16.gmra.mxu0 %v2123_v37  ;;  %989 = vmatmul.mubr.bf16.gmra.mxu1 %v2124_v39  ;;  %v2211_v37 = vld [vmem:[%s2862_s0 + $0x100] ss:$20 sps:$4 sm:$0xff]   ;;  %v2213_v39 = vld [vmem:[%s2862_s0 + $0x128] ss:$20 sps:$4 sm:$0xff]  }
  0x33   :  { %1891 = vmatpush3.bf16.msra.mxu1 %v2127_v40  ;;  %900 = vmatprep.mubr.bf16.mxu0 %v2130_v42  ;;  %v2214_v40 = vld [vmem:[%s2862_s0 + $0x1ec] ss:$20 sps:$4 sm:$0xff]   ;;  %v2217_v42 = vld [vmem:[%s2862_s0 + $0x1e8] ss:$20 sps:$4 sm:$0xff]  }
  0x34   :  { %1892 = vmatprep.subr.bf16.mxu1 %v2128_v41  ;;  %996 = vmatprep.mubr.bf16.mxu1 %v2132_v43  ;;  %v2216_v41 = vld [vmem:[%s2862_s0 + $0x150] ss:$20 sps:$4 sm:$0xff]   ;;  %v2218_v43 = vld [vmem:[%s2862_s0 + $0x178] ss:$20 sps:$4 sm:$0xff]  }
  0x35   :  { %2026 = vmatprep.subr.bf16.mxu0 %v2160_v52 }
  0x36   :  { %2027 = vmatpush3.bf16.msra.mxu0 %v2160_v52  ;;  %v2229_v52 = vld [vmem:[%s2862_s0 + $0x264] ss:$20 sps:$4 sm:$0xff]  }
  0x37   :  { %1893 = vmatpush3.bf16.msra.mxu1 %v2129_v44  ;;  %2028 = vmatprep.subr.bf16.mxu0 %v2173_v57  ;;  %v2219_v44 = vld [vmem:[%s2862_s0 + $0x214] ss:$20 sps:$4 sm:$0xff]  }
  0x38   :  { %1894 = vmatprep.subr.bf16.mxu1 %v2136_v48  ;;  %v2224_v48 = vld [vmem:[%s2862_s0 + $0x23c] ss:$20 sps:$4 sm:$0xff]  }
  0x3a   :  { %901 = vmatmul.mubr.bf16.gmra.mxu0 %v2134_v46  ;;  %997 = vmatmul.mubr.bf16.gmra.mxu1 %v2135_v47  ;;  %v2222_v46 = vld [vmem:[%s2862_s0 + $0x210] ss:$20 sps:$4 sm:$0xff]   ;;  %v2223_v47 = vld [vmem:[%s2862_s0 + $0x1c8] ss:$20 sps:$4 sm:$0xff]  }
  0x3b   :  { %1895 = vmatpush3.bf16.msra.mxu1 %v2137_v49  ;;  %908 = vmatprep.mubr.bf16.mxu0 %v2141_v51  ;;  %v2226_v49 = vld [vmem:[%s2862_s0 + $0x1f0] ss:$20 sps:$4 sm:$0xff]   ;;  %v2228_v51 = vld [vmem:[%s2862_s0 + $0x218] ss:$20 sps:$4 sm:$0xff]  }
  0x3c   :  { %1896 = vmatprep.subr.bf16.mxu1 %v2138_v50  ;;  %1037 = vmatprep.mubr.bf16.mxu1 %v2145_v53  ;;  %v2227_v50 = vld [vmem:[%s2862_s0 + $0x238] ss:$20 sps:$4 sm:$0xff]   ;;  %v2231_v53 = vld [vmem:[%s2862_s0 + $0x240] ss:$20 sps:$4 sm:$0xff]  }
  0x3d   :  { %2029 = vmatpush3.bf16.msra.mxu0 %v2173_v57 }
  0x3e   :  { %2030 = vmatprep.subr.bf16.mxu0 %v2180_v60 }
  0x3f   :  { %1897 = vmatpush3.bf16.msra.mxu1 %v2140_v54  ;;  %v2232_v54 = vld [vmem:[%s2862_s0 + $0x260] ss:$20 sps:$4 sm:$0xff]  }
  0x41   :  { %2031 = vmatpush3.bf16.msra.mxu0 %v2180_v60 }
  0x42   :  { %909 = vmatmul.mubr.bf16.gmra.mxu0 %v2146_v56  ;;  %1038 = vmatmul.mubr.bf16.vlgmr.msra.gmra.mxu1 %v2143_v55  ;;  %v2233_v55 = vld [vmem:[%s2862_s0 + $0x268] ss:$20 sps:$4 sm:$0xff]  }
  0x43   :  { %916 = vmatprep.mubr.bf16.mxu0 %v2147_v58  ;;  %1045 = vmatprep.mubr.bf16.mxu1 %v2149_v59 }
  0x44   :  { %2032 = vmatprep.subr.bf16.mxu0 %v2193_v1 }
  0x45   :  { %2033 = vmatpush3.bf16.msra.mxu0 %v2193_v1 }
  0x4a   :  { %917 = vmatmul.mubr.bf16.gmra.mxu0 %v2151_v61  ;;  %1046 = vmatmul.mubr.bf16.gmra.mxu1 %v2152_v62 }
  0x4b   :  { %924 = vmatprep.mubr.bf16.mxu0 %v2154_v63  ;;  %1053 = vmatprep.mubr.bf16.mxu1 %v2156_v0 }
  0x52   :  { %925 = vmatmul.mubr.bf16.gmra.mxu0 %v2158_v2  ;;  %1054 = vmatmul.mubr.bf16.gmra.mxu1 %v2159_v3 }
  0x53   :  { %932 = vmatprep.mubr.bf16.mxu0 %v2161_v4  ;;  %1061 = vmatprep.mubr.bf16.mxu1 %v2163_v5 }
  0x5a   :  { %933 = vmatmul.mubr.bf16.gmra.mxu0 %v2165_v6  ;;  %1062 = vmatmul.mubr.bf16.gmra.mxu1 %v2166_v7 }
  0x5b   :  { %940 = vmatprep.mubr.bf16.mxu0 %v2167_v8  ;;  %1069 = vmatprep.mubr.bf16.mxu1 %v2169_v9 }
  0x62   :  { %941 = vmatmul.mubr.bf16.gmra.mxu0 %v2171_v10  ;;  %1070 = vmatmul.mubr.bf16.gmra.mxu1 %v2172_v11 }
  0x63   :  { %948 = vmatprep.mubr.bf16.mxu0 %v2174_v12  ;;  %1077 = vmatprep.mubr.bf16.mxu1 %v2176_v13 }
  0x6a   :  { %949 = vmatmul.mubr.bf16.gmra.mxu0 %v2178_v14  ;;  %1078 = vmatmul.mubr.bf16.gmra.mxu1 %v2179_v15 }
  0x6b   :  { %956 = vmatprep.mubr.bf16.mxu0 %v2181_v16  ;;  %1085 = vmatprep.mubr.bf16.mxu1 %v2183_v17 }
  0x72   :  { %957 = vmatmul.mubr.bf16.gmra.mxu0 %v2185_v18  ;;  %1086 = vmatmul.mubr.bf16.gmra.mxu1 %v2186_v19 }
  0x73   :  { %964 = vmatprep.mubr.bf16.mxu0 %v2187_v20  ;;  %1093 = vmatprep.mubr.bf16.mxu1 %v2189_v21 }
  0x7a   :  { %965 = vmatmul.mubr.bf16.gmra.mxu0 %v2191_v22  ;;  %1094 = vmatmul.mubr.bf16.gmra.mxu1 %v2192_v23 }
  0x7b   :  { %1101 = vmatprep.mubr.bf16.mxu1 %v2194_v24  ;;  %2034 = vmatprep.mubr.bf16.mxu0 %v2196_v25 }
  0x82   :  { %1102 = vmatmul.mubr.bf16.gmra.mxu1 %v2197_v26  ;;  %2035 = vmatmul.mubr.bf16.vlgmr.msra.gmra.mxu0 %v2198_v27 }
  0x83   :  { %1109 = vmatprep.mubr.bf16.mxu1 %v2199_v28  ;;  %2038 = vmatprep.mubr.bf16.mxu0 %v2201_v29 }
  0x8a   :  { %1110 = vmatmul.mubr.bf16.gmra.mxu1 %v2202_v30  ;;  %2039 = vmatmul.mubr.bf16.gmra.mxu0 %v2203_v31 }
  0x8b   :  { %1117 = vmatprep.mubr.bf16.mxu1 %v2204_v32  ;;  %2042 = vmatprep.mubr.bf16.mxu0 %v2206_v33 }
  0x92   :  { %1118 = vmatmul.mubr.bf16.gmra.mxu1 %v2207_v34  ;;  %2043 = vmatmul.mubr.bf16.gmra.mxu0 %v2208_v35 }
  0x93   :  { %1125 = vmatprep.mubr.bf16.mxu1 %v2209_v36  ;;  %2046 = vmatprep.mubr.bf16.mxu0 %v2211_v37 }
  0x9a   :  { %1126 = vmatmul.mubr.bf16.gmra.mxu1 %v2212_v38  ;;  %2047 = vmatmul.mubr.bf16.gmra.mxu0 %v2213_v39 }
  0x9b   :  { %1133 = vmatprep.mubr.bf16.mxu1 %v2214_v40  ;;  %2050 = vmatprep.mubr.bf16.mxu0 %v2216_v41 }
  0xa2   :  { %1134 = vmatmul.mubr.bf16.gmra.mxu1 %v2217_v42  ;;  %2051 = vmatmul.mubr.bf16.gmra.mxu0 %v2218_v43 }
  0xa3   :  { %1141 = vmatprep.mubr.bf16.mxu1 %v2219_v44  ;;  %2054 = vmatprep.mubr.bf16.mxu0 %v2221_v45 }
  0xaa   :  { %1142 = vmatmul.mubr.bf16.gmra.mxu1 %v2222_v46  ;;  %2055 = vmatmul.mubr.bf16.gmra.mxu0 %v2223_v47 }
  0xab   :  { %1149 = vmatprep.mubr.bf16.mxu1 %v2224_v48  ;;  %2058 = vmatprep.mubr.bf16.mxu0 %v2226_v49 }
  0xb2   :  { %1150 = vmatmul.mubr.bf16.gmra.mxu1 %v2227_v50  ;;  %2059 = vmatmul.mubr.bf16.gmra.mxu0 %v2228_v51 }
  0xb3   :  { %1157 = vmatprep.mubr.bf16.mxu1 %v2229_v52  ;;  %2062 = vmatprep.mubr.bf16.mxu0 %v2231_v53 }
  0xba   :  { %1158 = vmatmul.mubr.bf16.gmra.mxu1 %v2232_v54  ;;  %2063 = vmatmul.mubr.bf16.gmra.mxu0 %v2233_v55 }
  0xe2   :  { %v1786_v56 = vpop.f32.mrf.mxu0  ;;  %v1858_v57 = vpop.f32.mrf.mxu1 }
  0xe4   :  { %v1787_v58 = vpop.f32.mrf.mxu0  ;;  %v1859_v59 = vpop.f32.mrf.mxu1 }
  0xe5   :  { %v1788_v60 = vadd.f32 %v1787_v58, %v1786_v56  ;;  %v2609_v61 = vadd.f32 %v1859_v59, %v1858_v57 }
  0xe6   :  { %v1789_v62 = vpop.f32.mrf.mxu0  ;;  %v1861_v63 = vpop.f32.mrf.mxu1 }
  0xe7   :  { %2864 = vst [vmem:[#allocation2_spill] sm:$0xff] %v2609_v61 }
  0xe8   :  { %v1790_v0 = vpop.f32.mrf.mxu0  ;;  %v1862_v1 = vpop.f32.mrf.mxu1 }
  0xe9   :  { %v2611_v2 = vadd.f32 %v1790_v0, %v1789_v62  ;;  %v2613_v3 = vadd.f32 %v1862_v1, %v1861_v63 }
  0xea   :  { %v1792_v4 = vpop.f32.mrf.mxu0  ;;  %v1864_v5 = vpop.f32.mrf.mxu1 }
  0xeb   :  { %2865 = vst [vmem:[#allocation3_spill] sm:$0xff] %v2613_v3 }
  0xec   :  { %v1793_v6 = vpop.f32.mrf.mxu0  ;;  %v1865_v7 = vpop.f32.mrf.mxu1 }
  0xed   :  { %v2615_v8 = vadd.f32 %v1793_v6, %v1792_v4  ;;  %v2617_v9 = vadd.f32 %v1865_v7, %v1864_v5 }
  0xee   :  { %v1795_v10 = vpop.f32.mrf.mxu0  ;;  %v1867_v11 = vpop.f32.mrf.mxu1 }
  0xef   :  { %2866 = vst [vmem:[#allocation4_spill] sm:$0xff] %v2617_v9 }
  0xf0   :  { %v1796_v12 = vpop.f32.mrf.mxu0  ;;  %v1868_v13 = vpop.f32.mrf.mxu1 }
  0xf1   :  { %v2619_v14 = vadd.f32 %v1796_v12, %v1795_v10  ;;  %v2621_v15 = vadd.f32 %v1868_v13, %v1867_v11 }
  0xf2   :  { %v1798_v16 = vpop.f32.mrf.mxu0  ;;  %v1870_v17 = vpop.f32.mrf.mxu1 }
  0xf3   :  { %2867 = vst [vmem:[#allocation5_spill] sm:$0xff] %v2621_v15 }
  0xf4   :  { %v1799_v18 = vpop.f32.mrf.mxu0  ;;  %v1871_v19 = vpop.f32.mrf.mxu1 }
  0xf5   :  { %v2623_v20 = vadd.f32 %v1799_v18, %v1798_v16  ;;  %v2625_v21 = vadd.f32 %v1871_v19, %v1870_v17 }
  0xf6   :  { %v1801_v22 = vpop.f32.mrf.mxu0  ;;  %v1873_v23 = vpop.f32.mrf.mxu1 }
  0xf7   :  { %2868 = vst [vmem:[#allocation6_spill] sm:$0xff] %v2625_v21 }
  0xf8   :  { %v1802_v24 = vpop.f32.mrf.mxu0  ;;  %v1874_v25 = vpop.f32.mrf.mxu1 }
  0xf9   :  { %v2627_v26 = vadd.f32 %v1802_v24, %v1801_v22  ;;  %v2629_v27 = vadd.f32 %v1874_v25, %v1873_v23 }
  0xfa   :  { %v1804_v28 = vpop.f32.mrf.mxu0  ;;  %v1876_v29 = vpop.f32.mrf.mxu1 }
  0xfb   :  { %2869 = vst [vmem:[#allocation7_spill] sm:$0xff] %v2629_v27 }
  0xfc   :  { %v1805_v30 = vpop.f32.mrf.mxu0  ;;  %v1877_v31 = vpop.f32.mrf.mxu1 }
  0xfd   :  { %v2631_v32 = vadd.f32 %v1805_v30, %v1804_v28  ;;  %v2633_v33 = vadd.f32 %v1877_v31, %v1876_v29 }
  0xfe   :  { %v1807_v34 = vpop.f32.mrf.mxu0  ;;  %v1879_v35 = vpop.f32.mrf.mxu1 }
  0xff   :  { %2870 = vst [vmem:[#allocation8_spill] sm:$0xff] %v2633_v33 }
 0x100   :  { %v1808_v36 = vpop.f32.mrf.mxu0  ;;  %v1880_v37 = vpop.f32.mrf.mxu1 }
 0x101   :  { %v2635_v38 = vadd.f32 %v1808_v36, %v1807_v34  ;;  %v2637_v39 = vadd.f32 %v1880_v37, %v1879_v35 }
 0x102   :  { %v1810_v40 = vpop.f32.mrf.mxu0  ;;  %v1898_v41 = vpop.f32.mrf.mxu1 }
 0x103   :  { %2871 = vst [vmem:[#allocation9_spill] sm:$0xff] %v2637_v39 }
 0x104   :  { %v1811_v42 = vpop.f32.mrf.mxu0  ;;  %v1899_v43 = vpop.f32.mrf.mxu1 }
 0x105   :  { %v2639_v44 = vadd.f32 %v1811_v42, %v1810_v40  ;;  %v1900_v45 = vadd.f32 %v1899_v43, %v1898_v41 }
 0x106   :  { %v1813_v46 = vpop.f32.mrf.mxu0  ;;  %v2641_v47 = vpop.f32.mrf.mxu1 }
 0x107   :  { %v2643_v48 = vadd.f32 %v1900_v45, %v1788_v60 }
 0x108   :  { %v1814_v49 = vpop.f32.mrf.mxu0  ;;  %v2645_v50 = vpop.f32.mrf.mxu1 }
 0x109   :  { %v2647_v51 = vadd.f32 %v1814_v49, %v1813_v46 }
 0x10a   :  { %v1816_v52 = vpop.f32.mrf.mxu0  ;;  %v1904_v53 = vpop.f32.mrf.mxu1 }
 0x10c   :  { %v1817_v54 = vpop.f32.mrf.mxu0  ;;  %v1905_v55 = vpop.f32.mrf.mxu1 }
 0x10d   :  { %v2649_v56 = vadd.f32 %v1817_v54, %v1816_v52  ;;  %v1906_v9 = vadd.f32 %v1905_v55, %v1904_v53 }
 0x10e   :  { %v1819_v57 = vpop.f32.mrf.mxu0  ;;  %v1907_v58 = vpop.f32.mrf.mxu1 }
 0x110   :  { %v1820_v59 = vpop.f32.mrf.mxu0  ;;  %v1908_v62 = vpop.f32.mrf.mxu1 }
 0x111   :  { %v2651_v63 = vadd.f32 %v1820_v59, %v1819_v57 }
 0x112   :  { %v1822_v0 = vpop.f32.mrf.mxu0  ;;  %v2653_v60 = vpop.f32.mrf.mxu1 }
 0x114   :  { %v1823_v1 = vpop.f32.mrf.mxu0  ;;  %v2655_v4 = vpop.f32.mrf.mxu1 }
 0x115   :  { %v2657_v5 = vadd.f32 %v1823_v1, %v1822_v0 }
 0x116   :  { %v1825_v6 = vpop.f32.mrf.mxu0  ;;  %v2659_v7 = vpop.f32.mrf.mxu1 }
 0x118   :  { %v1826_v10 = vpop.f32.mrf.mxu0  ;;  %v2661_v11 = vpop.f32.mrf.mxu1 }
 0x119   :  { %v2663_v12 = vadd.f32 %v1826_v10, %v1825_v6 }
 0x11a   :  { %v2665_v13 = vpop.f32.mrf.mxu0  ;;  %v1916_v16 = vpop.f32.mrf.mxu1 }
 0x11c   :  { %v2667_v17 = vpop.f32.mrf.mxu0  ;;  %v1917_v18 = vpop.f32.mrf.mxu1 }
 0x11d   :  { %v1918_v55 = vadd.f32 %v1917_v18, %v1916_v16 }
 0x11e   :  { %v2669_v19 = vpop.f32.mrf.mxu0  ;;  %v1919_v22 = vpop.f32.mrf.mxu1 }
 0x120   :  { %v2671_v23 = vpop.f32.mrf.mxu0  ;;  %v1920_v24 = vpop.f32.mrf.mxu1 }
 0x122   :  { %v1834_v25 = vpop.f32.mrf.mxu0  ;;  %v2673_v28 = vpop.f32.mrf.mxu1 }
 0x124   :  { %v1835_v29 = vpop.f32.mrf.mxu0  ;;  %v2675_v30 = vpop.f32.mrf.mxu1 }
 0x125   :  { %v2677_v31 = vadd.f32 %v1835_v29, %v1834_v25 }
 0x126   :  { %v2679_v34 = vpop.f32.mrf.mxu0  ;;  %v2681_v35 = vpop.f32.mrf.mxu1 }
 0x127   :  { %2872 = vst [vmem:[#allocation10_spill] sm:$0xff] %v2677_v31  ;;  %2873 = vst [vmem:[#allocation11_spill] sm:$0xff] %v2679_v34  ;;  %v1048_v31 = vadd.f32 %v1906_v9, %v2615_v8  ;;  %v1912_v9 = vadd.f32 %v2655_v4, %v2653_v60 }
 0x128   :  { %v2683_v36 = vpop.f32.mrf.mxu0  ;;  %v2685_v37 = vpop.f32.mrf.mxu1 }
 0x129   :  { %2874 = vst [vmem:[#allocation12_spill] sm:$0xff] %v2683_v36 }
 0x12a   :  { %v2687_v40 = vpop.f32.mrf.mxu0  ;;  %v1928_v41 = vpop.f32.mrf.mxu1 }
 0x12c   :  { %v2689_v42 = vpop.f32.mrf.mxu0  ;;  %v1929_v43 = vpop.f32.mrf.mxu1 }
 0x12e   :  { %v2691_v45 = vpop.f32.mrf.mxu0  ;;  %v1931_v46 = vpop.f32.mrf.mxu1 }
 0x12f   :  { %2875 = vst [vmem:[#allocation13_spill] sm:$0xff] %v2691_v45 }
 0x130   :  { %v2693_v49 = vpop.f32.mrf.mxu0  ;;  %v1932_v52 = vpop.f32.mrf.mxu1 }
 0x131   :  { %2876 = vst [vmem:[#allocation14_spill] sm:$0xff] %v2693_v49 }
 0x132   :  { %v2695_v54 = vpop.f32.mrf.mxu0  ;;  %v2697_v57 = vpop.f32.mrf.mxu1 }
 0x133   :  { %2877 = vst [vmem:[#allocation15_spill] sm:$0xff] %v2695_v54  ;;  %v1903_v54 = vadd.f32 %v2645_v50, %v2641_v47 }
 0x134   :  { %v2699_v59 = vpop.f32.mrf.mxu0  ;;  %v2701_v0 = vpop.f32.mrf.mxu1 }
 0x135   :  { %2878 = vst [vmem:[#allocation16_spill] sm:$0xff] %v2699_v59  ;;  %v1043_v53 = vadd.f32 %v1903_v54, %v2611_v2 }
 0x136   :  { %v2703_v1 = vpop.f32.mrf.mxu0  ;;  %v2705_v6 = vpop.f32.mrf.mxu1 }
 0x137   :  { %2879 = vst [vmem:[#allocation17_spill] sm:$0xff] %v2703_v1 }
 0x138   :  { %v2707_v10 = vpop.f32.mrf.mxu0  ;;  %v2709_v25 = vpop.f32.mrf.mxu1 }
 0x139   :  { %2880 = vst [vmem:[#allocation18_spill] sm:$0xff] %v2707_v10  ;;  %v1909_v10 = vadd.f32 %v1908_v62, %v1907_v58 }
 0x13a   :  { %v2711_v29 = vpop.f32.mrf.mxu0  ;;  %v2713_v39 = vpop.f32.mrf.mxu1 }
 0x13b   :  { %2881 = vst [vmem:[#allocation19_spill] sm:$0xff] %v2711_v29 }
 0x13c   :  { %v2715_v33 = vpop.f32.mrf.mxu0  ;;  %v2717_v27 = vpop.f32.mrf.mxu1 }
 0x13d   :  { %2882 = vst [vmem:[#allocation20_spill] sm:$0xff] %v2715_v33 }
 0x13e   :  { %v2719_v21 = vpop.f32.mrf.mxu0  ;;  %v2721_v3 = vpop.f32.mrf.mxu1 }
 0x13f   :  { %2883 = vst [vmem:[#allocation21_spill] sm:$0xff] %v2719_v21  ;;  %v1051_v21 = vadd.f32 %v1909_v10, %v2619_v14 }
 0x140   :  { %v2723_v61 = vpop.f32.mrf.mxu0  ;;  %v2725_v15 = vpop.f32.mrf.mxu1 }
 0x141   :  { %2884 = vst [vmem:[#allocation22_spill] sm:$0xff] %v2723_v61 }
 0x142   :  { %v2727_v1 = vpop.f32.mrf.mxu1  ;;  %v2036_v59 = vpop.f32.mrf.mxu0 }
 0x143   :  { %2885 = vst [vmem:[#allocation23_spill] sm:$0xff] %v2727_v1  ;;  %v1209_v34 = vadd.f32 %v2036_v59, %v1048_v31  ;;  %v1921_v1 = vadd.f32 %v1920_v24, %v1919_v22  ;;  %v1930_v22 = vadd.f32 %v1929_v43, %v1928_v41 }
 0x144   :  { %v2731_v29 = vpop.f32.mrf.mxu1  ;;  %v1200_v33 = vpop.f32.mrf.mxu0 }
 0x145   :  { %2886 = vst [vmem:[#allocation24_spill] sm:$0xff] %v2731_v29  ;;  %v1201_v47 = vadd.f32 %v1200_v33, %v2643_v48  ;;  %v1064_v33 = vadd.f32 %v1918_v55, %v2631_v32  ;;  %v1067_v48 = vadd.f32 %v1921_v1, %v2635_v38  ;;  %v1924_v38 = vadd.f32 %v2675_v30, %v2673_v28 }
 0x146   :  { %v2735_v36 = vpop.f32.mrf.mxu1  ;;  %v2037_v61 = vpop.f32.mrf.mxu0  ;;  %v1927_v1 = vadd.f32 %v2685_v37, %v2681_v35  ;;  %v1080_v43 = vadd.f32 %v1930_v22, %v2649_v56  ;;  %v1945_v56 = vadd.f32 %v2725_v15, %v2721_v3 }
 0x147   :  { %v1212_v49 = vadd.f32 %v2037_v61, %v1051_v21  ;;  %v1915_v61 = vadd.f32 %v2661_v11, %v2659_v7  ;;  %v1056_v7 = vadd.f32 %v1912_v9, %v2623_v20  ;;  %v1072_v37 = vadd.f32 %v1924_v38, %v2639_v44 }
 0x148   :  { %v2738_v58 = vpop.f32.mrf.mxu1  ;;  %v1203_v62 = vpop.f32.mrf.mxu0 }
 0x149   :  { %v1683_v50 = vpack.c.bf16 %v1212_v49, %v1209_v34  ;;  %v1204_v29 = vadd.f32 %v1203_v62, %v1043_v53  ;;  %v1059_v18 = vadd.f32 %v1915_v61, %v2627_v26  ;;  %v1933_v34 = vadd.f32 %v1932_v52, %v1931_v46 }
 0x14a   :  { %v2741_v45 = vpop.f32.mrf.mxu1  ;;  %v2040_v8 = vpop.f32.mrf.mxu0  ;;  %v1942_v53 = vadd.f32 %v2717_v27, %v2713_v39  ;;  %v1936_v27 = vadd.f32 %v2701_v0, %v2697_v57  ;;  %v1939_v39 = vadd.f32 %v2709_v25, %v2705_v6 }
 0x14b   :  { %1755 = vst [vmem:[%s2863_s2 + $0x8] sm:$0xff] %v1683_v50   ;;  %v1678_v2 = vpack.c.bf16 %v1204_v29, %v1201_v47  ;;  %v1225_v4 = vadd.f32 %v2040_v8, %v1064_v33  ;;  %v1083_v46 = vadd.f32 %v1933_v34, %v2651_v63  ;;  %v1075_v29 = vadd.f32 %v1927_v1, %v2647_v51  ;;  %v2888_v34 = vld [vmem:[#allocation14_spill] sm:$0xff] }
 0x14c   :  { %v1953_v14 = vpop.f32.mrf.mxu1  ;;  %v1216_v21 = vpop.f32.mrf.mxu0  ;;  %v1830_v8 = vadd.f32 %v2667_v17, %v2665_v13  ;;  %v1833_v51 = vadd.f32 %v2671_v23, %v2669_v19  ;;  %v1088_v57 = vadd.f32 %v1936_v27, %v2657_v5  ;;  %v1091_v6 = vadd.f32 %v1939_v39, %v2663_v12  ;;  %v2889_v5 = vld [vmem:[#allocation23_spill] sm:$0xff] }
 0x14d   :  { %1679 = vst [vmem:[%s2863_s2] sm:$0xff] %v1678_v2   ;;  %v1217_v49 = vadd.f32 %v1216_v21, %v1056_v7  ;;  %v1954_v25 = vadd.f32 %v1953_v14, %v2741_v45  ;;  %v1951_v12 = vadd.f32 %v2738_v58, %v2735_v36  ;;  %v2893_v36 = vld [vmem:[#allocation10_spill] sm:$0xff] }
 0x14e   :  { %v1955_v16 = vpop.f32.mrf.mxu1  ;;  %v2041_v60 = vpop.f32.mrf.mxu0  ;;  %v1096_v13 = vadd.f32 %v1942_v53, %v1830_v8  ;;  %v1099_v17 = vadd.f32 %v1945_v56, %v1833_v51  ;;  %v2894_v56 = vld [vmem:[#allocation19_spill] sm:$0xff]  ;;  %v2897_v51 = vld [vmem:[#allocation22_spill] sm:$0xff] }
 0x14f   :  { %v1228_v11 = vadd.f32 %v2041_v60, %v1067_v48 }
 0x150   :  { %v1956_v24 = vpop.f32.mrf.mxu1  ;;  %v1219_v31 = vpop.f32.mrf.mxu0 }
 0x151   :  { %v1693_v54 = vpack.c.bf16 %v1228_v11, %v1225_v4  ;;  %v1220_v59 = vadd.f32 %v1219_v31, %v1059_v18  ;;  %v1957_v48 = vadd.f32 %v1956_v24, %v1955_v16  ;;  %v1842_v11 = vadd.f32 %v2689_v42, %v2687_v40  ;;  %v2887_v31 = vld [vmem:[#allocation13_spill] sm:$0xff]  ;;  %v2891_v24 = vld [vmem:[#allocation11_spill] sm:$0xff]  ;;  %v2892_v40 = vld [vmem:[#allocation12_spill] sm:$0xff] }
 0x152   :  { %v2757_v10 = vpop.f32.mrf.mxu1  ;;  %v2044_v32 = vpop.f32.mrf.mxu0  ;;  %v1839_v42 = vadd.f32 %v2892_v40, %v2891_v24  ;;  %v2903_v24 = vld [vmem:[#allocation5_spill] sm:$0xff] }
 0x153   :  { %1757 = vst [vmem:[%s2863_s2 + $0x18] sm:$0xff] %v1693_v54   ;;  %v1688_v20 = vpack.c.bf16 %v1220_v59, %v1217_v49  ;;  %v1241_v35 = vadd.f32 %v2044_v32, %v1080_v43  ;;  %v1845_v49 = vadd.f32 %v2888_v34, %v2887_v31  ;;  %v2890_v54 = vld [vmem:[#allocation24_spill] sm:$0xff]  ;;  %v1112_v32 = vadd.f32 %v1954_v25, %v1842_v11 }
 0x154   :  { %v2766_v26 = vpop.f32.mrf.mxu1  ;;  %v1232_v41 = vpop.f32.mrf.mxu0  ;;  %v1948_v59 = vadd.f32 %v2890_v54, %v2889_v5 }
 0x155   :  { %1756 = vst [vmem:[%s2863_s2 + $0x10] sm:$0xff] %v1688_v20   ;;  %v1233_v47 = vadd.f32 %v1232_v41, %v1072_v37  ;;  %v1115_v38 = vadd.f32 %v1957_v48, %v1845_v49  ;;  %v1960_v39 = vadd.f32 %v2766_v26, %v2757_v10 }
 0x156   :  { %v2773_v28 = vpop.f32.mrf.mxu1  ;;  %v2045_v30 = vpop.f32.mrf.mxu0  ;;  %v1104_v58 = vadd.f32 %v1948_v59, %v2893_v36 }
 0x157   :  { %v1244_v52 = vadd.f32 %v2045_v30, %v1083_v46  ;;  %v1107_v46 = vadd.f32 %v1951_v12, %v1839_v42 }
 0x158   :  { %v2779_v55 = vpop.f32.mrf.mxu1  ;;  %v1235_v62 = vpop.f32.mrf.mxu0 }
 0x159   :  { %v1703_v63 = vpack.c.bf16 %v1244_v52, %v1241_v35  ;;  %v1236_v50 = vadd.f32 %v1235_v62, %v1075_v29 }
 0x15a   :  { %v1964_v9 = vpop.f32.mrf.mxu1  ;;  %v2048_v44 = vpop.f32.mrf.mxu0 }
 0x15b   :  { %1759 = vst [vmem:[%s2863_s2 + $0x28] sm:$0xff] %v1703_v63   ;;  %v1698_v3 = vpack.c.bf16 %v1236_v50, %v1233_v47  ;;  %v1257_v2 = vadd.f32 %v2048_v44, %v1096_v13  ;;  %v2895_v47 = vld [vmem:[#allocation20_spill] sm:$0xff]  ;;  %v2896_v44 = vld [vmem:[#allocation21_spill] sm:$0xff]  ;;  %v2898_v13 = vld [vmem:[#allocation15_spill] sm:$0xff] }
 0x15c   :  { %v1965_v15 = vpop.f32.mrf.mxu1  ;;  %v1248_v61 = vpop.f32.mrf.mxu0  ;;  %v1854_v63 = vadd.f32 %v2895_v47, %v2894_v56  ;;  %v1857_v27 = vadd.f32 %v2897_v51, %v2896_v44  ;;  %v2907_v51 = vld [vmem:[#allocation7_spill] sm:$0xff] }
 0x15d   :  { %1758 = vst [vmem:[%s2863_s2 + $0x20] sm:$0xff] %v1698_v3   ;;  %v1249_v60 = vadd.f32 %v1248_v61, %v1088_v57  ;;  %v1966_v30 = vadd.f32 %v1965_v15, %v1964_v9  ;;  %v1963_v9 = vadd.f32 %v2779_v55, %v2773_v28 }
 0x15e   :  { %v1967_v19 = vpop.f32.mrf.mxu1  ;;  %v2049_v23 = vpop.f32.mrf.mxu0 }
 0x15f   :  { %v1260_v0 = vadd.f32 %v2049_v23, %v1099_v17  ;;  %v2899_v17 = vld [vmem:[#allocation16_spill] sm:$0xff]  ;;  %v2900_v23 = vld [vmem:[#allocation17_spill] sm:$0xff]  ;;  %v1128_v10 = vadd.f32 %v1966_v30, %v1854_v63 }
 0x160   :  { %v1968_v21 = vpop.f32.mrf.mxu1  ;;  %v1251_v33 = vpop.f32.mrf.mxu0 }
 0x161   :  { %v1713_v4 = vpack.c.bf16 %v1260_v0, %v1257_v2  ;;  %v1252_v7 = vadd.f32 %v1251_v33, %v1091_v6  ;;  %v1969_v52 = vadd.f32 %v1968_v21, %v1967_v19  ;;  %v1848_v19 = vadd.f32 %v2899_v17, %v2898_v13  ;;  %v2901_v2 = vld [vmem:[#allocation18_spill] sm:$0xff] }
 0x162   :  { %v1970_v18 = vpop.f32.mrf.mxu1  ;;  %v2052_v22 = vpop.f32.mrf.mxu0  ;;  %v1851_v57 = vadd.f32 %v2901_v2, %v2900_v23 }
 0x163   :  { %1761 = vst [vmem:[%s2863_s2 + $0x38] sm:$0xff] %v1713_v4   ;;  %v1708_v45 = vpack.c.bf16 %v1252_v7, %v1249_v60  ;;  %v1273_v41 = vadd.f32 %v2052_v22, %v1112_v32  ;;  %v1131_v26 = vadd.f32 %v1969_v52, %v1857_v27  ;;  %v1120_v6 = vadd.f32 %v1960_v39, %v1848_v19  ;;  %v2909_v19 = vld [vmem:[#allocation9_spill] sm:$0xff] }
 0x164   :  { %v1971_v14 = vpop.f32.mrf.mxu1  ;;  %v1264_v16 = vpop.f32.mrf.mxu0  ;;  %v1123_v21 = vadd.f32 %v1963_v9, %v1851_v57 }
 0x165   :  { %1760 = vst [vmem:[%s2863_s2 + $0x30] sm:$0xff] %v1708_v45   ;;  %v1265_v29 = vadd.f32 %v1264_v16, %v1104_v58  ;;  %v1972_v49 = vadd.f32 %v1971_v14, %v1970_v18  ;;  %v2902_v45 = vld [vmem:[#allocation4_spill] sm:$0xff]  ;;  %v2904_v18 = vld [vmem:[#allocation2_spill] sm:$0xff] }
 0x166   :  { %v1973_v1 = vpop.f32.mrf.mxu1  ;;  %v2053_v20 = vpop.f32.mrf.mxu0 }
 0x167   :  { %v1276_v43 = vadd.f32 %v2053_v20, %v1115_v38  ;;  %v1136_v14 = vadd.f32 %v1972_v49, %v2904_v18  ;;  %v2905_v20 = vld [vmem:[#allocation3_spill] sm:$0xff] }
 0x168   :  { %v1974_v35 = vpop.f32.mrf.mxu1  ;;  %v1267_v37 = vpop.f32.mrf.mxu0 }
 0x169   :  { %v1723_v53 = vpack.c.bf16 %v1276_v43, %v1273_v41  ;;  %v1268_v62 = vadd.f32 %v1267_v37, %v1107_v46  ;;  %v1975_v5 = vadd.f32 %v1974_v35, %v1973_v1 }
 0x16a   :  { %v1976_v50 = vpop.f32.mrf.mxu1  ;;  %v2056_v8 = vpop.f32.mrf.mxu0 }
 0x16b   :  { %1763 = vst [vmem:[%s2863_s2 + $0x48] sm:$0xff] %v1723_v53   ;;  %v1718_v3 = vpack.c.bf16 %v1268_v62, %v1265_v29  ;;  %v1289_v0 = vadd.f32 %v2056_v8, %v1128_v10  ;;  %v1139_v41 = vadd.f32 %v1975_v5, %v2905_v20  ;;  %v2906_v8 = vld [vmem:[#allocation6_spill] sm:$0xff] }
 0x16c   :  { %v1977_v15 = vpop.f32.mrf.mxu1  ;;  %v1280_v61 = vpop.f32.mrf.mxu0 }
 0x16d   :  { %1762 = vst [vmem:[%s2863_s2 + $0x40] sm:$0xff] %v1718_v3   ;;  %v1978_v33 = vadd.f32 %v1977_v15, %v1976_v50  ;;  %v1281_v4 = vadd.f32 %v1280_v61, %v1120_v6  ;;  %v2908_v3 = vld [vmem:[#allocation8_spill] sm:$0xff] }
 0x16e   :  { %v1979_v28 = vpop.f32.mrf.mxu1  ;;  %v2057_v55 = vpop.f32.mrf.mxu0 }
 0x16f   :  { %v1292_v25 = vadd.f32 %v2057_v55, %v1131_v26  ;;  %v1144_v16 = vadd.f32 %v1978_v33, %v2902_v45 }
 0x170   :  { %v1980_v48 = vpop.f32.mrf.mxu1  ;;  %v1283_v60 = vpop.f32.mrf.mxu0 }
 0x171   :  { %v1733_v7 = vpack.c.bf16 %v1292_v25, %v1289_v0  ;;  %v1981_v11 = vadd.f32 %v1980_v48, %v1979_v28  ;;  %v1284_v22 = vadd.f32 %v1283_v60, %v1123_v21 }
 0x172   :  { %v1982_v31 = vpop.f32.mrf.mxu1  ;;  %v2060_v34 = vpop.f32.mrf.mxu0 }
 0x173   :  { %1765 = vst [vmem:[%s2863_s2 + $0x58] sm:$0xff] %v1733_v7   ;;  %v1728_v54 = vpack.c.bf16 %v1284_v22, %v1281_v4  ;;  %v1147_v40 = vadd.f32 %v1981_v11, %v2903_v24  ;;  %v1305_v38 = vadd.f32 %v2060_v34, %v1144_v16 }
 0x174   :  { %v1983_v59 = vpop.f32.mrf.mxu1  ;;  %v1296_v12 = vpop.f32.mrf.mxu0 }
 0x175   :  { %1764 = vst [vmem:[%s2863_s2 + $0x50] sm:$0xff] %v1728_v54   ;;  %v1297_v43 = vadd.f32 %v1296_v12, %v1136_v14  ;;  %v1984_v52 = vadd.f32 %v1983_v59, %v1982_v31 }
 0x176   :  { %v1985_v42 = vpop.f32.mrf.mxu1  ;;  %v2061_v32 = vpop.f32.mrf.mxu0 }
 0x177   :  { %v1308_v1 = vadd.f32 %v2061_v32, %v1147_v40  ;;  %v1152_v44 = vadd.f32 %v1984_v52, %v2906_v8 }
 0x178   :  { %v1986_v36 = vpop.f32.mrf.mxu1  ;;  %v1299_v58 = vpop.f32.mrf.mxu0 }
 0x179   :  { %v1743_v46 = vpack.c.bf16 %v1308_v1, %v1305_v38  ;;  %v1300_v30 = vadd.f32 %v1299_v58, %v1139_v41  ;;  %v1987_v29 = vadd.f32 %v1986_v36, %v1985_v42 }
 0x17a   :  { %v1988_v35 = vpop.f32.mrf.mxu1  ;;  %v2064_v37 = vpop.f32.mrf.mxu0 }
 0x17b   :  { %1767 = vst [vmem:[%s2863_s2 + $0x68] sm:$0xff] %v1743_v46   ;;  %v1738_v53 = vpack.c.bf16 %v1300_v30, %v1297_v43  ;;  %v1155_v27 = vadd.f32 %v1987_v29, %v2907_v51 }
 0x17c   :  { %v1989_v62 = vpop.f32.mrf.mxu1  ;;  %v1312_v56 = vpop.f32.mrf.mxu0 }
 0x17d   :  { %1766 = vst [vmem:[%s2863_s2 + $0x60] sm:$0xff] %v1738_v53   ;;  %v1990_v47 = vadd.f32 %v1989_v62, %v1988_v35  ;;  %v1313_v61 = vadd.f32 %v1312_v56, %v1152_v44 }
 0x17e   :  { %v1991_v63 = vpop.f32.mrf.mxu1  ;;  %v2065_v50 = vpop.f32.mrf.mxu0 }
 0x17f   :  { %v1160_v15 = vadd.f32 %v1990_v47, %v2908_v3 }
 0x180   :  { %v1992_v39 = vpop.f32.mrf.mxu1  ;;  %v1315_v9 = vpop.f32.mrf.mxu0 }
 0x181   :  { %v1993_v13 = vadd.f32 %v1992_v39, %v1991_v63  ;;  %v1316_v17 = vadd.f32 %v1315_v9, %v1155_v27  ;;  %v1321_v57 = vadd.f32 %v2064_v37, %v1160_v15 }
 0x183   :  { %v1163_v23 = vadd.f32 %v1993_v13, %v2909_v19  ;;  %v1748_v2 = vpack.c.bf16 %v1316_v17, %v1313_v61 }
 0x185   :  { %v1324_v10 = vadd.f32 %v2065_v50, %v1163_v23  ;;  %1768 = vst [vmem:[%s2863_s2 + $0x70] sm:$0xff] %v1748_v2  }
 0x187   :  { %v1753_v26 = vpack.c.bf16 %v1324_v10, %v1321_v57 }
 0x189   :  { %1769 = vst [vmem:[%s2863_s2 + $0x78] sm:$0xff] %v1753_v26  }

</bundles_post_ra>
